<compile_context>
chip_gen: v7x
topology: tpu7x:2x2x1
jax: 0.10.0
libtpu: 0.0.40
codegen_flags: <defaults>
</compile_context>

<pallas_src>
import functools

import jax
import jax.numpy as jnp
from jax.experimental import pallas as pl
from jax.experimental.pallas import tpu as pltpu

EPS = 1e-5          # torch.nn.LayerNorm default
LANE = 128


# ----------------------------------------------------------------------------- helpers
def _round_up(x, m):
    return ((x + m - 1) // m) * m


def _pad_axis(a, axis, target):
    if a.shape[axis] == target:
        return a
    pad = [(0, 0)] * a.ndim
    pad[axis] = (0, target - a.shape[axis])
    return jnp.pad(a, pad)


def _gelu_tanh(x):
    # TODO(synk): torch.nn.functional.gelu defaults to exact erf GELU; the tanh
    # approximation (used identically in kernel and reference) differs <~3e-3.
    c = 0.7978845608028654  # sqrt(2 / pi)
    return 0.5 * x * (1.0 + jnp.tanh(c * (x + 0.044715 * x * x * x)))


def _layernorm(x, g, b, inv_dim):
    """LayerNorm over the first `dim` lanes of a (rows, Dp) f32 tile.

    Padding lanes of x are exactly zero, so plain sums give exact statistics
    (no iota/where masking needed); gamma/beta padding lanes are zero so the
    output padding lanes stay exactly zero.  f32 stats, biased variance.
    """
    mean = jnp.sum(x, axis=-1, keepdims=True) * inv_dim
    msq = jnp.sum(x * x, axis=-1, keepdims=True) * inv_dim
    var = jnp.maximum(msq - mean * mean, 0.0)
    return (x - mean) * jax.lax.rsqrt(var + EPS) * g + b


# ----------------------------------------------------------------------------- fused all-layer kernel
def _transformer_layers_kernel(x_ref, ln1_g_ref, ln1_b_ref, wqkv_ref, wo_ref,
                               bo_ref, ln2_g_ref, ln2_b_ref, w1_ref, b1_ref,
                               w2_ref, b2_ref, o_ref, x_vmem,
                               *, dim, heads, dim_head, hp):
    B, N, Dp = x_ref.shape
    R = B * N
    inner = heads * dim_head
    scale = float(dim_head) ** -0.5
    inv_dim = 1.0 / float(dim)

    # Load the embedded tokens into the resident VMEM residual stream once.
    @pl.when(pl.program_id(0) == 0)
    def _():
        x_vmem[...] = x_ref[...].reshape(R, Dp)

    x = x_vmem[...]                                            # (R, Dp) f32

    # ---------------- Residual(PreNorm(Attention)) ----------------
    y = _layernorm(x, ln1_g_ref[0].astype(jnp.float32),
                   ln1_b_ref[0].astype(jnp.float32), inv_dim)
    y16 = y.astype(jnp.bfloat16)                               # bf16 MXU feed, f32 acc

    # One fused QKV projection: (R, Dp) x (Dp, 3*inner).
    qkv = jnp.dot(y16, wqkv_ref[0], preferred_element_type=jnp.float32)

    head_outs = []
    for h in range(heads):                                     # static unroll (small #heads)
        lo = h * dim_head
        q = qkv[:, lo:lo + dim_head].reshape(B, N, dim_head)
        k = qkv[:, inner + lo:inner + lo + dim_head].reshape(B, N, dim_head)
        v = qkv[:, 2 * inner + lo:2 * inner + lo + dim_head].reshape(B, N, dim_head)
        sim = jnp.einsum("bnd,bmd->bnm", q, k,
                         preferred_element_type=jnp.float32) * scale   # (B, N, N)
        sim = sim - jnp.max(sim, axis=-1, keepdims=True)
        p = jnp.exp(sim)
        attn = p * pl.reciprocal(jnp.sum(p, axis=-1, keepdims=True), approx=True)
        out_h = jnp.einsum("bnm,bmd->bnd", attn, v,
                           preferred_element_type=jnp.float32)          # (B, N, dh)
        head_outs.append(out_h.reshape(R, dim_head))

    o_cat = jnp.concatenate(head_outs, axis=-1)                # (R, inner), torch head order

    # One fused output projection: (R, inner) x (inner, Dp).
    attn_out = (jnp.dot(o_cat.astype(jnp.bfloat16), wo_ref[0],
                        preferred_element_type=jnp.float32)
                + bo_ref[0].astype(jnp.float32))
    x = x + attn_out                                           # padding lanes stay zero

    # ---------------- Residual(PreNorm(FeedForward GEGLU)) ----------------
    y = _layernorm(x, ln2_g_ref[0].astype(jnp.float32),
                   ln2_b_ref[0].astype(jnp.float32), inv_dim)
    y16 = y.astype(jnp.bfloat16)

    hidden = (jnp.dot(y16, w1_ref[0], preferred_element_type=jnp.float32)
              + b1_ref[0].astype(jnp.float32))                 # (R, 2*hp)
    a = hidden[:, :hp]                                         # GEGLU value half (128-aligned)
    gates = hidden[:, hp:]                                     # GEGLU gate half
    mid = a * _gelu_tanh(gates)

    ff_out = (jnp.dot(mid.astype(jnp.bfloat16), w2_ref[0],
                      preferred_element_type=jnp.float32)
              + b2_ref[0].astype(jnp.float32))
    x = x + ff_out

    x_vmem[...] = x                                            # carry to next layer
    o_ref[...] = x.reshape(B, N, Dp)                           # written back at grid end


def transformer_layers(x, prepped, *, dim, heads, dim_head, hp):
    """x: (B, N, Dp) f32 (zero padding lanes) -> all `depth` layers applied."""
    B, N, Dp = x.shape
    depth = prepped["wqkv"].shape[0]
    inner = heads * dim_head
    kernel = functools.partial(_transformer_layers_kernel, dim=dim, heads=heads,
                               dim_head=dim_head, hp=hp)
    per_layer = lambda i: (i, 0, 0)
    const = lambda i: (0, 0, 0)
    return pl.pallas_call(
        kernel,
        out_shape=jax.ShapeDtypeStruct((B, N, Dp), jnp.float32),
        grid_spec=pltpu.PrefetchScalarGridSpec(
            num_scalar_prefetch=0,
            grid=(depth,),
            in_specs=[
                pl.BlockSpec((B, N, Dp), const),               # embedded tokens (fetched once)
                pl.BlockSpec((1, 1, Dp), per_layer),           # ln1 gamma
                pl.BlockSpec((1, 1, Dp), per_layer),           # ln1 beta
                pl.BlockSpec((1, Dp, 3 * inner), per_layer),   # fused Wqkv (bf16)
                pl.BlockSpec((1, inner, Dp), per_layer),       # fused Wo   (bf16)
                pl.BlockSpec((1, 1, Dp), per_layer),           # bo
                pl.BlockSpec((1, 1, Dp), per_layer),           # ln2 gamma
                pl.BlockSpec((1, 1, Dp), per_layer),           # ln2 beta
                pl.BlockSpec((1, Dp, 2 * hp), per_layer),      # W1 [value | gates] (bf16)
                pl.BlockSpec((1, 1, 2 * hp), per_layer),       # b1 [value | gates]
                pl.BlockSpec((1, hp, Dp), per_layer),          # W2 (bf16)
                pl.BlockSpec((1, 1, Dp), per_layer),           # b2
            ],
            out_specs=pl.BlockSpec((B, N, Dp), const),
            scratch_shapes=[pltpu.VMEM((B * N, Dp), jnp.float32)],   # resident residual stream
        ),
        compiler_params=pltpu.CompilerParams(
            dimension_semantics=("arbitrary",)),               # layers are sequential
    )(x, prepped["ln1_g"], prepped["ln1_b"], prepped["wqkv"], prepped["wo"],
      prepped["bo"], prepped["ln2_g"], prepped["ln2_b"], prepped["w1"],
      prepped["b1"], prepped["w2"], prepped["b2"])


# ----------------------------------------------------------------------------- one-time parameter prep
def prepare_params(params, *, dim, heads, dim_head):
    """Pad / stack weights once (hoisted out of the forward, per review)."""
    Dp = _round_up(dim, LANE)
    hp = _round_up(4 * dim, LANE)
    half = 4 * dim

    def stack(fn):
        return jnp.stack([fn(l) for l in params["layers"]], axis=0)

    def pad_vec(v):                                            # (dim,) -> (1, Dp), zero padded
        return _pad_axis(v.reshape(1, -1), 1, Dp)

    def pack_w1(l):                                            # (dim, 8*dim) -> (Dp, 2*hp)
        w1 = l["w1"]
        w1a = _pad_axis(_pad_axis(w1[:, :half], 0, Dp), 1, hp)
        w1g = _pad_axis(_pad_axis(w1[:, half:], 0, Dp), 1, hp)
        return jnp.concatenate([w1a, w1g], axis=1)

    def pack_b1(l):                                            # (8*dim,) -> (1, 2*hp)
        b1 = l["b1"]
        return jnp.concatenate([_pad_axis(b1[:half].reshape(1, -1), 1, hp),
                                _pad_axis(b1[half:].reshape(1, -1), 1, hp)], axis=1)

    prepped = dict(
        embed=_pad_axis(params["embed"], 1, Dp),               # (V, Dp) f32, zero padding lanes
        ln1_g=stack(lambda l: pad_vec(l["ln1_g"])),
        ln1_b=stack(lambda l: pad_vec(l["ln1_b"])),
        wqkv=stack(lambda l: _pad_axis(l["wqkv"], 0, Dp)),     # (depth, Dp, 3*inner) bf16
        wo=stack(lambda l: _pad_axis(l["wo"], 1, Dp)),         # (depth, inner, Dp) bf16
        bo=stack(lambda l: pad_vec(l["bo"])),
        ln2_g=stack(lambda l: pad_vec(l["ln2_g"])),
        ln2_b=stack(lambda l: pad_vec(l["ln2_b"])),
        w1=stack(pack_w1),                                     # (depth, Dp, 2*hp) bf16
        b1=stack(pack_b1),                                     # (depth, 1, 2*hp)
        w2=stack(lambda l: _pad_axis(_pad_axis(l["w2"], 0, hp), 1, Dp)),  # (depth, hp, Dp) bf16
        b2=stack(lambda l: pad_vec(l["b2"])),
    )
    return prepped


# ----------------------------------------------------------------------------- full forward
def transformer_forward(prepped, tokens, *, dim, heads, dim_head):
    """Pallas forward of the TabTransformer `Transformer` module (inference).

    tokens: (B, N) int categorical ids.  Returns (B, N, dim) f32.
    Dropout (attn_dropout / ff_dropout) is an identity in inference mode.
    """
    embed_p = prepped["embed"]                                 # (V, Dp) f32
    V, Dp = embed_p.shape
    hp = prepped["w2"].shape[1]
    B, N = tokens.shape

    # torch clamps out-of-range ids (plus a warning print we skip).
    idx = jnp.clip(tokens, 0, V - 1).astype(jnp.int32).reshape(-1)
    # Tiny (V=16) table: XLA gather in the wrapper (per perf review) instead of
    # a per-row Pallas gather kernel.
    x = jnp.take(embed_p, idx, axis=0).reshape(B, N, Dp)       # padding lanes are zero

    x = transformer_layers(x, prepped, dim=dim, heads=heads,
                           dim_head=dim_head, hp=hp)
    return x[..., :dim]                                        # drop lane padding


# ----------------------------------------------------------------------------- pure-JAX reference
def _layer_norm_ref(x, g, b):
    x = x.astype(jnp.float32)
    mean = jnp.mean(x, axis=-1, keepdims=True)
    cent = x - mean
    var = jnp.mean(cent * cent, axis=-1, keepdims=True)
    return cent * jax.lax.rsqrt(var + EPS) * g + b


def transformer_ref(params, tokens, *, dim, heads, dim_head):
    """Reference mirroring the PyTorch module with the kernel's numerics policy
    (f32 LayerNorm stats, bf16 matmul inputs with f32 accumulation)."""
    embed = params["embed"]
    V = embed.shape[0]
    B, N = tokens.shape
    inner = heads * dim_head
    scale = dim_head ** (-0.5)

    x = jnp.take(embed, jnp.clip(tokens, 0, V - 1), axis=0)    # (B, N, dim)
    for layer in params["layers"]:
        # Residual(PreNorm(Attention))
        y16 = _layer_norm_ref(x, layer["ln1_g"], layer["ln1_b"]).astype(jnp.bfloat16)
        qkv = jnp.dot(y16, layer["wqkv"], preferred_element_type=jnp.float32)
        q, k, v = jnp.split(qkv, 3, axis=-1)
        q, k, v = (t.reshape(B, N, heads, dim_head).transpose(0, 2, 1, 3)
                   for t in (q, k, v))
        sim = jnp.einsum("bhid,bhjd->bhij", q, k, precision="highest") * scale
        sim = sim - jnp.max(sim, axis=-1, keepdims=True)
        p = jnp.exp(sim)
        attn = p / jnp.sum(p, axis=-1, keepdims=True)
        o = jnp.einsum("bhij,bhjd->bhid", attn, v, precision="highest")
        o = o.transpose(0, 2, 1, 3).reshape(B, N, inner)
        o = jnp.dot(o.astype(jnp.bfloat16), layer["wo"],
                    preferred_element_type=jnp.float32) + layer["bo"]
        x = x + o
        # Residual(PreNorm(FeedForward)) with GEGLU
        y16 = _layer_norm_ref(x, layer["ln2_g"], layer["ln2_b"]).astype(jnp.bfloat16)
        hidden = (jnp.dot(y16, layer["w1"], preferred_element_type=jnp.float32)
                  + layer["b1"])
        a, gates = jnp.split(hidden, 2, axis=-1)
        mid = a * _gelu_tanh(gates)
        o = (jnp.dot(mid.astype(jnp.bfloat16), layer["w2"],
                     preferred_element_type=jnp.float32) + layer["b2"])
        x = x + o
    return x


# ----------------------------------------------------------------------------- deterministic init
def init_params(key, *, num_tokens, dim, depth, heads, dim_head):
    inner = heads * dim_head
    keys = jax.random.split(key, depth + 1)
    embed = jax.random.normal(keys[0], (num_tokens, dim), jnp.float32)
    layers = []
    for d in range(depth):
        ks = jax.random.split(keys[d + 1], 10)
        layers.append(dict(
            ln1_g=1.0 + 0.1 * jax.random.normal(ks[0], (dim,), jnp.float32),
            ln1_b=0.1 * jax.random.normal(ks[1], (dim,), jnp.float32),
            wqkv=(jax.random.normal(ks[2], (dim, 3 * inner), jnp.float32)
                  / jnp.sqrt(dim)).astype(jnp.bfloat16),
            wo=(jax.random.normal(ks[3], (inner, dim), jnp.float32)
                / jnp.sqrt(inner)).astype(jnp.bfloat16),
            bo=0.1 * jax.random.normal(ks[4], (dim,), jnp.float32),
            ln2_g=1.0 + 0.1 * jax.random.normal(ks[5], (dim,), jnp.float32),
            ln2_b=0.1 * jax.random.normal(ks[6], (dim,), jnp.float32),
            w1=(jax.random.normal(ks[7], (dim, 8 * dim), jnp.float32)
                / jnp.sqrt(dim)).astype(jnp.bfloat16),
            b1=0.1 * jax.random.normal(ks[8], (8 * dim,), jnp.float32),
            w2=(jax.random.normal(ks[9], (4 * dim, dim), jnp.float32)
                / jnp.sqrt(4 * dim)).astype(jnp.bfloat16),
            b2=jnp.zeros((dim,), jnp.float32),
        ))
    return {"embed": embed, "layers": layers}


if __name__ == "__main__":
    key = jax.random.PRNGKey(0)
    # Transformer(num_tokens=16, dim=32, depth=2, heads=8, dim_head=16, ...)
    num_tokens, dim, depth, heads, dim_head = 16, 32, 2, 8, 16
    B, N = 2, 8                                   # batch=2, #categorical columns=8

    kp, kt = jax.random.split(key)
    params = init_params(kp, num_tokens=num_tokens, dim=dim, depth=depth,
                         heads=heads, dim_head=dim_head)
    tokens = jax.random.randint(kt, (B, N), 0, num_tokens, dtype=jnp.int32)

    prepped = prepare_params(params, dim=dim, heads=heads, dim_head=dim_head)

    out = transformer_forward(prepped, tokens, dim=dim, heads=heads,
                              dim_head=dim_head)
    out = jax.block_until_ready(out)

    ref = transformer_ref(params, tokens, dim=dim, heads=heads,
                          dim_head=dim_head)
    ref = jax.block_until_ready(ref)

    assert out.shape == (B, N, dim), out.shape
    max_err = float(jnp.max(jnp.abs(out - ref)))
    assert jnp.allclose(out, ref, atol=2e-2, rtol=2e-2), (
        f"mismatch vs reference, max_err={max_err}")

    print("KERNEL_OK")
</pallas_src>

<mosaic_0001>
module attributes {stable_mosaic.version = 11 : i64} {
  func.func @_transformer_layers_kernel(%arg0: i32, %arg1: memref<2x8x128xf32, #tpu.memory_space<vmem>>, %arg2: memref<1x1x128xf32, #tpu.memory_space<vmem>>, %arg3: memref<1x1x128xf32, #tpu.memory_space<vmem>>, %arg4: memref<1x128x384xbf16, #tpu.memory_space<vmem>>, %arg5: memref<1x128x128xbf16, #tpu.memory_space<vmem>>, %arg6: memref<1x1x128xf32, #tpu.memory_space<vmem>>, %arg7: memref<1x1x128xf32, #tpu.memory_space<vmem>>, %arg8: memref<1x1x128xf32, #tpu.memory_space<vmem>>, %arg9: memref<1x128x256xbf16, #tpu.memory_space<vmem>>, %arg10: memref<1x1x256xf32, #tpu.memory_space<vmem>>, %arg11: memref<1x128x128xbf16, #tpu.memory_space<vmem>>, %arg12: memref<1x1x128xf32, #tpu.memory_space<vmem>>, %arg13: memref<2x8x128xf32, #tpu.memory_space<vmem>>, %arg14: memref<16x128xf32, #tpu.memory_space<vmem>>) attributes {dimension_semantics = [#tpu.dimension_semantics<arbitrary>], iteration_bounds = array<i64: 2>, scalar_prefetch = 0 : i64, scratch_operands = 1 : i64, tpu.core_type = #tpu.core_type<tc>, window_params = [{pipeline_mode = #tpu.pipeline_mode<synchronous>, transform_indices = @transform_0, window_bounds = array<i64: 2, 8, 128>}, {transform_indices = @transform_1, window_bounds = array<i64: 1, 1, 128>}, {transform_indices = @transform_2, window_bounds = array<i64: 1, 1, 128>}, {transform_indices = @transform_3, window_bounds = array<i64: 1, 128, 384>}, {transform_indices = @transform_4, window_bounds = array<i64: 1, 128, 128>}, {transform_indices = @transform_5, window_bounds = array<i64: 1, 1, 128>}, {transform_indices = @transform_6, window_bounds = array<i64: 1, 1, 128>}, {transform_indices = @transform_7, window_bounds = array<i64: 1, 1, 128>}, {transform_indices = @transform_8, window_bounds = array<i64: 1, 128, 256>}, {transform_indices = @transform_9, window_bounds = array<i64: 1, 1, 256>}, {transform_indices = @transform_10, window_bounds = array<i64: 1, 128, 128>}, {transform_indices = @transform_11, window_bounds = array<i64: 1, 1, 128>}, {pipeline_mode = #tpu.pipeline_mode<synchronous>, transform_indices = @transform_12, window_bounds = array<i64: 2, 8, 128>}]} {
    %c0_i32 = arith.constant 0 : i32
    %0 = arith.cmpi eq, %arg0, %c0_i32 : i32
    %1 = arith.extui %0 : i1 to i32
    %c0_i32_0 = arith.constant 0 : i32
    %2 = arith.cmpi ne, %1, %c0_i32_0 : i32
    scf.if %2 {
      %c0_99 = arith.constant 0 : index
      %c0_100 = arith.constant 0 : index
      %c0_101 = arith.constant 0 : index
      %278 = vector.load %arg1[%c0_99, %c0_100, %c0_101] : memref<2x8x128xf32, #tpu.memory_space<vmem>>, vector<2x8x128xf32>
      %279 = vector.shape_cast %278 : vector<2x8x128xf32> to vector<16x128xf32>
      %c0_102 = arith.constant 0 : index
      %c0_103 = arith.constant 0 : index
      %280 = vector.load %arg14[%c0_102, %c0_103] : memref<16x128xf32, #tpu.memory_space<vmem>>, vector<16x128xf32>
      tpu.vector_store %arg14[%c0_102, %c0_103], %279 {strides = array<i32>} : memref<16x128xf32, #tpu.memory_space<vmem>>, vector<16x128xf32>,
    } else {
    }
    %c0 = arith.constant 0 : index
    %c0_1 = arith.constant 0 : index
    %3 = vector.load %arg14[%c0, %c0_1] : memref<16x128xf32, #tpu.memory_space<vmem>>, vector<16x128xf32>
    %c0_2 = arith.constant 0 : index
    %c0_3 = arith.constant 0 : index
    %c0_4 = arith.constant 0 : index
    %4 = vector.load %arg2[%c0_2, %c0_3, %c0_4] : memref<1x1x128xf32, #tpu.memory_space<vmem>>, vector<1x1x128xf32>
    %5 = vector.shape_cast %4 : vector<1x1x128xf32> to vector<1x128xf32>
    %c0_5 = arith.constant 0 : index
    %c0_6 = arith.constant 0 : index
    %c0_7 = arith.constant 0 : index
    %6 = vector.load %arg3[%c0_5, %c0_6, %c0_7] : memref<1x1x128xf32, #tpu.memory_space<vmem>>, vector<1x1x128xf32>
    %7 = vector.shape_cast %6 : vector<1x1x128xf32> to vector<1x128xf32>
    %cst = arith.constant dense<0.000000e+00> : vector<16xf32>
    %8 = vector.multi_reduction <add>, %3, %cst [1] : vector<16x128xf32> to vector<16xf32>
    %9 = vector.shape_cast %8 : vector<16xf32> to vector<16x1xf32>
    %cst_8 = arith.constant 3.125000e-02 : f32
    %10 = vector.broadcast %cst_8 : f32 to vector<16x1xf32>
    %11 = arith.mulf %9, %10 : vector<16x1xf32>
    %12 = arith.mulf %3, %3 : vector<16x128xf32>
    %cst_9 = arith.constant dense<0.000000e+00> : vector<16xf32>
    %13 = vector.multi_reduction <add>, %12, %cst_9 [1] : vector<16x128xf32> to vector<16xf32>
    %14 = vector.shape_cast %13 : vector<16xf32> to vector<16x1xf32>
    %cst_10 = arith.constant 3.125000e-02 : f32
    %15 = vector.broadcast %cst_10 : f32 to vector<16x1xf32>
    %16 = arith.mulf %14, %15 : vector<16x1xf32>
    %17 = arith.mulf %11, %11 : vector<16x1xf32>
    %18 = arith.subf %16, %17 : vector<16x1xf32>
    %cst_11 = arith.constant 0.000000e+00 : f32
    %19 = vector.broadcast %cst_11 : f32 to vector<16x1xf32>
    %20 = arith.maximumf %18, %19 : vector<16x1xf32>
    %21 = vector.broadcast %11 : vector<16x1xf32> to vector<16x128xf32>
    %22 = arith.subf %3, %21 : vector<16x128xf32>
    %cst_12 = arith.constant 9.99999974E-6 : f32
    %23 = vector.broadcast %cst_12 : f32 to vector<16x1xf32>
    %24 = arith.addf %20, %23 : vector<16x1xf32>
    %25 = math.rsqrt %24 : vector<16x1xf32>
    %26 = vector.broadcast %25 : vector<16x1xf32> to vector<16x128xf32>
    %27 = arith.mulf %22, %26 : vector<16x128xf32>
    %28 = vector.broadcast %5 : vector<1x128xf32> to vector<16x128xf32>
    %29 = arith.mulf %27, %28 : vector<16x128xf32>
    %30 = vector.broadcast %7 : vector<1x128xf32> to vector<16x128xf32>
    %31 = arith.addf %29, %30 : vector<16x128xf32>
    %32 = arith.truncf %31 : vector<16x128xf32> to vector<16x128xbf16>
    %c0_13 = arith.constant 0 : index
    %c0_14 = arith.constant 0 : index
    %c0_15 = arith.constant 0 : index
    %33 = vector.load %arg4[%c0_13, %c0_14, %c0_15] : memref<1x128x384xbf16, #tpu.memory_space<vmem>>, vector<1x128x384xbf16>
    %34 = vector.shape_cast %33 : vector<1x128x384xbf16> to vector<128x384xbf16>
    %cst_16 = arith.constant dense<0.000000e+00> : vector<16x384xf32>
    %35 = tpu.matmul %32, %34, %cst_16 {dimension_numbers = #tpu.dot_dimension_numbers<[1], [0], [0], [1], [0, 0, 1, 1], [], []>} : vector<16x128xbf16>, vector<128x384xbf16>, vector<16x384xf32> -> vector<16x384xf32>
    %36 = vector.extract_strided_slice %35 {offsets = [0, 0], sizes = [16, 16], strides = [1, 1]} : vector<16x384xf32> to vector<16x16xf32>
    %37 = vector.shape_cast %36 : vector<16x16xf32> to vector<2x8x16xf32>
    %38 = vector.extract_strided_slice %35 {offsets = [0, 128], sizes = [16, 16], strides = [1, 1]} : vector<16x384xf32> to vector<16x16xf32>
    %39 = vector.shape_cast %38 : vector<16x16xf32> to vector<2x8x16xf32>
    %40 = vector.extract_strided_slice %35 {offsets = [0, 256], sizes = [16, 16], strides = [1, 1]} : vector<16x384xf32> to vector<16x16xf32>
    %41 = vector.shape_cast %40 : vector<16x16xf32> to vector<2x8x16xf32>
    "tpu.trace_start"() <{level = 10 : i32, message = "bnd,bmd->bnm"}> : () -> ()
    %cst_17 = arith.constant dense<0.000000e+00> : vector<2x8x8xf32>
    %42 = tpu.matmul %37, %39, %cst_17 {dimension_numbers = #tpu.dot_dimension_numbers<[2], [2], [1], [1], [0, 0, 0, 1, 1, 1], [0], [0]>} : vector<2x8x16xf32>, vector<2x8x16xf32>, vector<2x8x8xf32> -> vector<2x8x8xf32>
    "tpu.trace_stop"() : () -> ()
    %cst_18 = arith.constant 2.500000e-01 : f32
    %43 = vector.broadcast %cst_18 : f32 to vector<2x8x8xf32>
    %44 = arith.mulf %42, %43 : vector<2x8x8xf32>
    %cst_19 = arith.constant dense<0xFF800000> : vector<2x8xf32>
    %45 = vector.multi_reduction <maximumf>, %44, %cst_19 [2] : vector<2x8x8xf32> to vector<2x8xf32>
    %46 = vector.shape_cast %45 : vector<2x8xf32> to vector<2x8x1xf32>
    %47 = vector.broadcast %46 : vector<2x8x1xf32> to vector<2x8x8xf32>
    %48 = arith.subf %44, %47 : vector<2x8x8xf32>
    %49 = math.exp %48 : vector<2x8x8xf32>
    %cst_20 = arith.constant dense<0.000000e+00> : vector<2x8xf32>
    %50 = vector.multi_reduction <add>, %49, %cst_20 [2] : vector<2x8x8xf32> to vector<2x8xf32>
    %51 = vector.shape_cast %50 : vector<2x8xf32> to vector<2x8x1xf32>
    %52 = tpu.reciprocal %51 {approx = true} : vector<2x8x1xf32> -> vector<2x8x1xf32>
    %53 = vector.broadcast %52 : vector<2x8x1xf32> to vector<2x8x8xf32>
    %54 = arith.mulf %49, %53 : vector<2x8x8xf32>
    "tpu.trace_start"() <{level = 10 : i32, message = "bnm,bmd->bnd"}> : () -> ()
    %cst_21 = arith.constant dense<0.000000e+00> : vector<2x8x16xf32>
    %55 = tpu.matmul %54, %41, %cst_21 {dimension_numbers = #tpu.dot_dimension_numbers<[2], [1], [1], [2], [0, 0, 0, 1, 1, 2], [0], [0]>} : vector<2x8x8xf32>, vector<2x8x16xf32>, vector<2x8x16xf32> -> vector<2x8x16xf32>
    "tpu.trace_stop"() : () -> ()
    %56 = vector.shape_cast %55 : vector<2x8x16xf32> to vector<16x16xf32>
    %57 = vector.extract_strided_slice %35 {offsets = [0, 16], sizes = [16, 16], strides = [1, 1]} : vector<16x384xf32> to vector<16x16xf32>
    %58 = vector.shape_cast %57 : vector<16x16xf32> to vector<2x8x16xf32>
    %59 = vector.extract_strided_slice %35 {offsets = [0, 144], sizes = [16, 16], strides = [1, 1]} : vector<16x384xf32> to vector<16x16xf32>
    %60 = vector.shape_cast %59 : vector<16x16xf32> to vector<2x8x16xf32>
    %61 = vector.extract_strided_slice %35 {offsets = [0, 272], sizes = [16, 16], strides = [1, 1]} : vector<16x384xf32> to vector<16x16xf32>
    %62 = vector.shape_cast %61 : vector<16x16xf32> to vector<2x8x16xf32>
    "tpu.trace_start"() <{level = 10 : i32, message = "bnd,bmd->bnm"}> : () -> ()
    %cst_22 = arith.constant dense<0.000000e+00> : vector<2x8x8xf32>
    %63 = tpu.matmul %58, %60, %cst_22 {dimension_numbers = #tpu.dot_dimension_numbers<[2], [2], [1], [1], [0, 0, 0, 1, 1, 1], [0], [0]>} : vector<2x8x16xf32>, vector<2x8x16xf32>, vector<2x8x8xf32> -> vector<2x8x8xf32>
    "tpu.trace_stop"() : () -> ()
    %cst_23 = arith.constant 2.500000e-01 : f32
    %64 = vector.broadcast %cst_23 : f32 to vector<2x8x8xf32>
    %65 = arith.mulf %63, %64 : vector<2x8x8xf32>
    %cst_24 = arith.constant dense<0xFF800000> : vector<2x8xf32>
    %66 = vector.multi_reduction <maximumf>, %65, %cst_24 [2] : vector<2x8x8xf32> to vector<2x8xf32>
    %67 = vector.shape_cast %66 : vector<2x8xf32> to vector<2x8x1xf32>
    %68 = vector.broadcast %67 : vector<2x8x1xf32> to vector<2x8x8xf32>
    %69 = arith.subf %65, %68 : vector<2x8x8xf32>
    %70 = math.exp %69 : vector<2x8x8xf32>
    %cst_25 = arith.constant dense<0.000000e+00> : vector<2x8xf32>
    %71 = vector.multi_reduction <add>, %70, %cst_25 [2] : vector<2x8x8xf32> to vector<2x8xf32>
    %72 = vector.shape_cast %71 : vector<2x8xf32> to vector<2x8x1xf32>
    %73 = tpu.reciprocal %72 {approx = true} : vector<2x8x1xf32> -> vector<2x8x1xf32>
    %74 = vector.broadcast %73 : vector<2x8x1xf32> to vector<2x8x8xf32>
    %75 = arith.mulf %70, %74 : vector<2x8x8xf32>
    "tpu.trace_start"() <{level = 10 : i32, message = "bnm,bmd->bnd"}> : () -> ()
    %cst_26 = arith.constant dense<0.000000e+00> : vector<2x8x16xf32>
    %76 = tpu.matmul %75, %62, %cst_26 {dimension_numbers = #tpu.dot_dimension_numbers<[2], [1], [1], [2], [0, 0, 0, 1, 1, 2], [0], [0]>} : vector<2x8x8xf32>, vector<2x8x16xf32>, vector<2x8x16xf32> -> vector<2x8x16xf32>
    "tpu.trace_stop"() : () -> ()
    %77 = vector.shape_cast %76 : vector<2x8x16xf32> to vector<16x16xf32>
    %78 = vector.extract_strided_slice %35 {offsets = [0, 32], sizes = [16, 16], strides = [1, 1]} : vector<16x384xf32> to vector<16x16xf32>
    %79 = vector.shape_cast %78 : vector<16x16xf32> to vector<2x8x16xf32>
    %80 = vector.extract_strided_slice %35 {offsets = [0, 160], sizes = [16, 16], strides = [1, 1]} : vector<16x384xf32> to vector<16x16xf32>
    %81 = vector.shape_cast %80 : vector<16x16xf32> to vector<2x8x16xf32>
    %82 = vector.extract_strided_slice %35 {offsets = [0, 288], sizes = [16, 16], strides = [1, 1]} : vector<16x384xf32> to vector<16x16xf32>
    %83 = vector.shape_cast %82 : vector<16x16xf32> to vector<2x8x16xf32>
    "tpu.trace_start"() <{level = 10 : i32, message = "bnd,bmd->bnm"}> : () -> ()
    %cst_27 = arith.constant dense<0.000000e+00> : vector<2x8x8xf32>
    %84 = tpu.matmul %79, %81, %cst_27 {dimension_numbers = #tpu.dot_dimension_numbers<[2], [2], [1], [1], [0, 0, 0, 1, 1, 1], [0], [0]>} : vector<2x8x16xf32>, vector<2x8x16xf32>, vector<2x8x8xf32> -> vector<2x8x8xf32>
    "tpu.trace_stop"() : () -> ()
    %cst_28 = arith.constant 2.500000e-01 : f32
    %85 = vector.broadcast %cst_28 : f32 to vector<2x8x8xf32>
    %86 = arith.mulf %84, %85 : vector<2x8x8xf32>
    %cst_29 = arith.constant dense<0xFF800000> : vector<2x8xf32>
    %87 = vector.multi_reduction <maximumf>, %86, %cst_29 [2] : vector<2x8x8xf32> to vector<2x8xf32>
    %88 = vector.shape_cast %87 : vector<2x8xf32> to vector<2x8x1xf32>
    %89 = vector.broadcast %88 : vector<2x8x1xf32> to vector<2x8x8xf32>
    %90 = arith.subf %86, %89 : vector<2x8x8xf32>
    %91 = math.exp %90 : vector<2x8x8xf32>
    %cst_30 = arith.constant dense<0.000000e+00> : vector<2x8xf32>
    %92 = vector.multi_reduction <add>, %91, %cst_30 [2] : vector<2x8x8xf32> to vector<2x8xf32>
    %93 = vector.shape_cast %92 : vector<2x8xf32> to vector<2x8x1xf32>
    %94 = tpu.reciprocal %93 {approx = true} : vector<2x8x1xf32> -> vector<2x8x1xf32>
    %95 = vector.broadcast %94 : vector<2x8x1xf32> to vector<2x8x8xf32>
    %96 = arith.mulf %91, %95 : vector<2x8x8xf32>
    "tpu.trace_start"() <{level = 10 : i32, message = "bnm,bmd->bnd"}> : () -> ()
    %cst_31 = arith.constant dense<0.000000e+00> : vector<2x8x16xf32>
    %97 = tpu.matmul %96, %83, %cst_31 {dimension_numbers = #tpu.dot_dimension_numbers<[2], [1], [1], [2], [0, 0, 0, 1, 1, 2], [0], [0]>} : vector<2x8x8xf32>, vector<2x8x16xf32>, vector<2x8x16xf32> -> vector<2x8x16xf32>
    "tpu.trace_stop"() : () -> ()
    %98 = vector.shape_cast %97 : vector<2x8x16xf32> to vector<16x16xf32>
    %99 = vector.extract_strided_slice %35 {offsets = [0, 48], sizes = [16, 16], strides = [1, 1]} : vector<16x384xf32> to vector<16x16xf32>
    %100 = vector.shape_cast %99 : vector<16x16xf32> to vector<2x8x16xf32>
    %101 = vector.extract_strided_slice %35 {offsets = [0, 176], sizes = [16, 16], strides = [1, 1]} : vector<16x384xf32> to vector<16x16xf32>
    %102 = vector.shape_cast %101 : vector<16x16xf32> to vector<2x8x16xf32>
    %103 = vector.extract_strided_slice %35 {offsets = [0, 304], sizes = [16, 16], strides = [1, 1]} : vector<16x384xf32> to vector<16x16xf32>
    %104 = vector.shape_cast %103 : vector<16x16xf32> to vector<2x8x16xf32>
    "tpu.trace_start"() <{level = 10 : i32, message = "bnd,bmd->bnm"}> : () -> ()
    %cst_32 = arith.constant dense<0.000000e+00> : vector<2x8x8xf32>
    %105 = tpu.matmul %100, %102, %cst_32 {dimension_numbers = #tpu.dot_dimension_numbers<[2], [2], [1], [1], [0, 0, 0, 1, 1, 1], [0], [0]>} : vector<2x8x16xf32>, vector<2x8x16xf32>, vector<2x8x8xf32> -> vector<2x8x8xf32>
    "tpu.trace_stop"() : () -> ()
    %cst_33 = arith.constant 2.500000e-01 : f32
    %106 = vector.broadcast %cst_33 : f32 to vector<2x8x8xf32>
    %107 = arith.mulf %105, %106 : vector<2x8x8xf32>
    %cst_34 = arith.constant dense<0xFF800000> : vector<2x8xf32>
    %108 = vector.multi_reduction <maximumf>, %107, %cst_34 [2] : vector<2x8x8xf32> to vector<2x8xf32>
    %109 = vector.shape_cast %108 : vector<2x8xf32> to vector<2x8x1xf32>
    %110 = vector.broadcast %109 : vector<2x8x1xf32> to vector<2x8x8xf32>
    %111 = arith.subf %107, %110 : vector<2x8x8xf32>
    %112 = math.exp %111 : vector<2x8x8xf32>
    %cst_35 = arith.constant dense<0.000000e+00> : vector<2x8xf32>
    %113 = vector.multi_reduction <add>, %112, %cst_35 [2] : vector<2x8x8xf32> to vector<2x8xf32>
    %114 = vector.shape_cast %113 : vector<2x8xf32> to vector<2x8x1xf32>
    %115 = tpu.reciprocal %114 {approx = true} : vector<2x8x1xf32> -> vector<2x8x1xf32>
    %116 = vector.broadcast %115 : vector<2x8x1xf32> to vector<2x8x8xf32>
    %117 = arith.mulf %112, %116 : vector<2x8x8xf32>
    "tpu.trace_start"() <{level = 10 : i32, message = "bnm,bmd->bnd"}> : () -> ()
    %cst_36 = arith.constant dense<0.000000e+00> : vector<2x8x16xf32>
    %118 = tpu.matmul %117, %104, %cst_36 {dimension_numbers = #tpu.dot_dimension_numbers<[2], [1], [1], [2], [0, 0, 0, 1, 1, 2], [0], [0]>} : vector<2x8x8xf32>, vector<2x8x16xf32>, vector<2x8x16xf32> -> vector<2x8x16xf32>
    "tpu.trace_stop"() : () -> ()
    %119 = vector.shape_cast %118 : vector<2x8x16xf32> to vector<16x16xf32>
    %120 = vector.extract_strided_slice %35 {offsets = [0, 64], sizes = [16, 16], strides = [1, 1]} : vector<16x384xf32> to vector<16x16xf32>
    %121 = vector.shape_cast %120 : vector<16x16xf32> to vector<2x8x16xf32>
    %122 = vector.extract_strided_slice %35 {offsets = [0, 192], sizes = [16, 16], strides = [1, 1]} : vector<16x384xf32> to vector<16x16xf32>
    %123 = vector.shape_cast %122 : vector<16x16xf32> to vector<2x8x16xf32>
    %124 = vector.extract_strided_slice %35 {offsets = [0, 320], sizes = [16, 16], strides = [1, 1]} : vector<16x384xf32> to vector<16x16xf32>
    %125 = vector.shape_cast %124 : vector<16x16xf32> to vector<2x8x16xf32>
    "tpu.trace_start"() <{level = 10 : i32, message = "bnd,bmd->bnm"}> : () -> ()
    %cst_37 = arith.constant dense<0.000000e+00> : vector<2x8x8xf32>
    %126 = tpu.matmul %121, %123, %cst_37 {dimension_numbers = #tpu.dot_dimension_numbers<[2], [2], [1], [1], [0, 0, 0, 1, 1, 1], [0], [0]>} : vector<2x8x16xf32>, vector<2x8x16xf32>, vector<2x8x8xf32> -> vector<2x8x8xf32>
    "tpu.trace_stop"() : () -> ()
    %cst_38 = arith.constant 2.500000e-01 : f32
    %127 = vector.broadcast %cst_38 : f32 to vector<2x8x8xf32>
    %128 = arith.mulf %126, %127 : vector<2x8x8xf32>
    %cst_39 = arith.constant dense<0xFF800000> : vector<2x8xf32>
    %129 = vector.multi_reduction <maximumf>, %128, %cst_39 [2] : vector<2x8x8xf32> to vector<2x8xf32>
    %130 = vector.shape_cast %129 : vector<2x8xf32> to vector<2x8x1xf32>
    %131 = vector.broadcast %130 : vector<2x8x1xf32> to vector<2x8x8xf32>
    %132 = arith.subf %128, %131 : vector<2x8x8xf32>
    %133 = math.exp %132 : vector<2x8x8xf32>
    %cst_40 = arith.constant dense<0.000000e+00> : vector<2x8xf32>
    %134 = vector.multi_reduction <add>, %133, %cst_40 [2] : vector<2x8x8xf32> to vector<2x8xf32>
    %135 = vector.shape_cast %134 : vector<2x8xf32> to vector<2x8x1xf32>
    %136 = tpu.reciprocal %135 {approx = true} : vector<2x8x1xf32> -> vector<2x8x1xf32>
    %137 = vector.broadcast %136 : vector<2x8x1xf32> to vector<2x8x8xf32>
    %138 = arith.mulf %133, %137 : vector<2x8x8xf32>
    "tpu.trace_start"() <{level = 10 : i32, message = "bnm,bmd->bnd"}> : () -> ()
    %cst_41 = arith.constant dense<0.000000e+00> : vector<2x8x16xf32>
    %139 = tpu.matmul %138, %125, %cst_41 {dimension_numbers = #tpu.dot_dimension_numbers<[2], [1], [1], [2], [0, 0, 0, 1, 1, 2], [0], [0]>} : vector<2x8x8xf32>, vector<2x8x16xf32>, vector<2x8x16xf32> -> vector<2x8x16xf32>
    "tpu.trace_stop"() : () -> ()
    %140 = vector.shape_cast %139 : vector<2x8x16xf32> to vector<16x16xf32>
    %141 = vector.extract_strided_slice %35 {offsets = [0, 80], sizes = [16, 16], strides = [1, 1]} : vector<16x384xf32> to vector<16x16xf32>
    %142 = vector.shape_cast %141 : vector<16x16xf32> to vector<2x8x16xf32>
    %143 = vector.extract_strided_slice %35 {offsets = [0, 208], sizes = [16, 16], strides = [1, 1]} : vector<16x384xf32> to vector<16x16xf32>
    %144 = vector.shape_cast %143 : vector<16x16xf32> to vector<2x8x16xf32>
    %145 = vector.extract_strided_slice %35 {offsets = [0, 336], sizes = [16, 16], strides = [1, 1]} : vector<16x384xf32> to vector<16x16xf32>
    %146 = vector.shape_cast %145 : vector<16x16xf32> to vector<2x8x16xf32>
    "tpu.trace_start"() <{level = 10 : i32, message = "bnd,bmd->bnm"}> : () -> ()
    %cst_42 = arith.constant dense<0.000000e+00> : vector<2x8x8xf32>
    %147 = tpu.matmul %142, %144, %cst_42 {dimension_numbers = #tpu.dot_dimension_numbers<[2], [2], [1], [1], [0, 0, 0, 1, 1, 1], [0], [0]>} : vector<2x8x16xf32>, vector<2x8x16xf32>, vector<2x8x8xf32> -> vector<2x8x8xf32>
    "tpu.trace_stop"() : () -> ()
    %cst_43 = arith.constant 2.500000e-01 : f32
    %148 = vector.broadcast %cst_43 : f32 to vector<2x8x8xf32>
    %149 = arith.mulf %147, %148 : vector<2x8x8xf32>
    %cst_44 = arith.constant dense<0xFF800000> : vector<2x8xf32>
    %150 = vector.multi_reduction <maximumf>, %149, %cst_44 [2] : vector<2x8x8xf32> to vector<2x8xf32>
    %151 = vector.shape_cast %150 : vector<2x8xf32> to vector<2x8x1xf32>
    %152 = vector.broadcast %151 : vector<2x8x1xf32> to vector<2x8x8xf32>
    %153 = arith.subf %149, %152 : vector<2x8x8xf32>
    %154 = math.exp %153 : vector<2x8x8xf32>
    %cst_45 = arith.constant dense<0.000000e+00> : vector<2x8xf32>
    %155 = vector.multi_reduction <add>, %154, %cst_45 [2] : vector<2x8x8xf32> to vector<2x8xf32>
    %156 = vector.shape_cast %155 : vector<2x8xf32> to vector<2x8x1xf32>
    %157 = tpu.reciprocal %156 {approx = true} : vector<2x8x1xf32> -> vector<2x8x1xf32>
    %158 = vector.broadcast %157 : vector<2x8x1xf32> to vector<2x8x8xf32>
    %159 = arith.mulf %154, %158 : vector<2x8x8xf32>
    "tpu.trace_start"() <{level = 10 : i32, message = "bnm,bmd->bnd"}> : () -> ()
    %cst_46 = arith.constant dense<0.000000e+00> : vector<2x8x16xf32>
    %160 = tpu.matmul %159, %146, %cst_46 {dimension_numbers = #tpu.dot_dimension_numbers<[2], [1], [1], [2], [0, 0, 0, 1, 1, 2], [0], [0]>} : vector<2x8x8xf32>, vector<2x8x16xf32>, vector<2x8x16xf32> -> vector<2x8x16xf32>
    "tpu.trace_stop"() : () -> ()
    %161 = vector.shape_cast %160 : vector<2x8x16xf32> to vector<16x16xf32>
    %162 = vector.extract_strided_slice %35 {offsets = [0, 96], sizes = [16, 16], strides = [1, 1]} : vector<16x384xf32> to vector<16x16xf32>
    %163 = vector.shape_cast %162 : vector<16x16xf32> to vector<2x8x16xf32>
    %164 = vector.extract_strided_slice %35 {offsets = [0, 224], sizes = [16, 16], strides = [1, 1]} : vector<16x384xf32> to vector<16x16xf32>
    %165 = vector.shape_cast %164 : vector<16x16xf32> to vector<2x8x16xf32>
    %166 = vector.extract_strided_slice %35 {offsets = [0, 352], sizes = [16, 16], strides = [1, 1]} : vector<16x384xf32> to vector<16x16xf32>
    %167 = vector.shape_cast %166 : vector<16x16xf32> to vector<2x8x16xf32>
    "tpu.trace_start"() <{level = 10 : i32, message = "bnd,bmd->bnm"}> : () -> ()
    %cst_47 = arith.constant dense<0.000000e+00> : vector<2x8x8xf32>
    %168 = tpu.matmul %163, %165, %cst_47 {dimension_numbers = #tpu.dot_dimension_numbers<[2], [2], [1], [1], [0, 0, 0, 1, 1, 1], [0], [0]>} : vector<2x8x16xf32>, vector<2x8x16xf32>, vector<2x8x8xf32> -> vector<2x8x8xf32>
    "tpu.trace_stop"() : () -> ()
    %cst_48 = arith.constant 2.500000e-01 : f32
    %169 = vector.broadcast %cst_48 : f32 to vector<2x8x8xf32>
    %170 = arith.mulf %168, %169 : vector<2x8x8xf32>
    %cst_49 = arith.constant dense<0xFF800000> : vector<2x8xf32>
    %171 = vector.multi_reduction <maximumf>, %170, %cst_49 [2] : vector<2x8x8xf32> to vector<2x8xf32>
    %172 = vector.shape_cast %171 : vector<2x8xf32> to vector<2x8x1xf32>
    %173 = vector.broadcast %172 : vector<2x8x1xf32> to vector<2x8x8xf32>
    %174 = arith.subf %170, %173 : vector<2x8x8xf32>
    %175 = math.exp %174 : vector<2x8x8xf32>
    %cst_50 = arith.constant dense<0.000000e+00> : vector<2x8xf32>
    %176 = vector.multi_reduction <add>, %175, %cst_50 [2] : vector<2x8x8xf32> to vector<2x8xf32>
    %177 = vector.shape_cast %176 : vector<2x8xf32> to vector<2x8x1xf32>
    %178 = tpu.reciprocal %177 {approx = true} : vector<2x8x1xf32> -> vector<2x8x1xf32>
    %179 = vector.broadcast %178 : vector<2x8x1xf32> to vector<2x8x8xf32>
    %180 = arith.mulf %175, %179 : vector<2x8x8xf32>
    "tpu.trace_start"() <{level = 10 : i32, message = "bnm,bmd->bnd"}> : () -> ()
    %cst_51 = arith.constant dense<0.000000e+00> : vector<2x8x16xf32>
    %181 = tpu.matmul %180, %167, %cst_51 {dimension_numbers = #tpu.dot_dimension_numbers<[2], [1], [1], [2], [0, 0, 0, 1, 1, 2], [0], [0]>} : vector<2x8x8xf32>, vector<2x8x16xf32>, vector<2x8x16xf32> -> vector<2x8x16xf32>
    "tpu.trace_stop"() : () -> ()
    %182 = vector.shape_cast %181 : vector<2x8x16xf32> to vector<16x16xf32>
    %183 = vector.extract_strided_slice %35 {offsets = [0, 112], sizes = [16, 16], strides = [1, 1]} : vector<16x384xf32> to vector<16x16xf32>
    %184 = vector.shape_cast %183 : vector<16x16xf32> to vector<2x8x16xf32>
    %185 = vector.extract_strided_slice %35 {offsets = [0, 240], sizes = [16, 16], strides = [1, 1]} : vector<16x384xf32> to vector<16x16xf32>
    %186 = vector.shape_cast %185 : vector<16x16xf32> to vector<2x8x16xf32>
    %187 = vector.extract_strided_slice %35 {offsets = [0, 368], sizes = [16, 16], strides = [1, 1]} : vector<16x384xf32> to vector<16x16xf32>
    %188 = vector.shape_cast %187 : vector<16x16xf32> to vector<2x8x16xf32>
    "tpu.trace_start"() <{level = 10 : i32, message = "bnd,bmd->bnm"}> : () -> ()
    %cst_52 = arith.constant dense<0.000000e+00> : vector<2x8x8xf32>
    %189 = tpu.matmul %184, %186, %cst_52 {dimension_numbers = #tpu.dot_dimension_numbers<[2], [2], [1], [1], [0, 0, 0, 1, 1, 1], [0], [0]>} : vector<2x8x16xf32>, vector<2x8x16xf32>, vector<2x8x8xf32> -> vector<2x8x8xf32>
    "tpu.trace_stop"() : () -> ()
    %cst_53 = arith.constant 2.500000e-01 : f32
    %190 = vector.broadcast %cst_53 : f32 to vector<2x8x8xf32>
    %191 = arith.mulf %189, %190 : vector<2x8x8xf32>
    %cst_54 = arith.constant dense<0xFF800000> : vector<2x8xf32>
    %192 = vector.multi_reduction <maximumf>, %191, %cst_54 [2] : vector<2x8x8xf32> to vector<2x8xf32>
    %193 = vector.shape_cast %192 : vector<2x8xf32> to vector<2x8x1xf32>
    %194 = vector.broadcast %193 : vector<2x8x1xf32> to vector<2x8x8xf32>
    %195 = arith.subf %191, %194 : vector<2x8x8xf32>
    %196 = math.exp %195 : vector<2x8x8xf32>
    %cst_55 = arith.constant dense<0.000000e+00> : vector<2x8xf32>
    %197 = vector.multi_reduction <add>, %196, %cst_55 [2] : vector<2x8x8xf32> to vector<2x8xf32>
    %198 = vector.shape_cast %197 : vector<2x8xf32> to vector<2x8x1xf32>
    %199 = tpu.reciprocal %198 {approx = true} : vector<2x8x1xf32> -> vector<2x8x1xf32>
    %200 = vector.broadcast %199 : vector<2x8x1xf32> to vector<2x8x8xf32>
    %201 = arith.mulf %196, %200 : vector<2x8x8xf32>
    "tpu.trace_start"() <{level = 10 : i32, message = "bnm,bmd->bnd"}> : () -> ()
    %cst_56 = arith.constant dense<0.000000e+00> : vector<2x8x16xf32>
    %202 = tpu.matmul %201, %188, %cst_56 {dimension_numbers = #tpu.dot_dimension_numbers<[2], [1], [1], [2], [0, 0, 0, 1, 1, 2], [0], [0]>} : vector<2x8x8xf32>, vector<2x8x16xf32>, vector<2x8x16xf32> -> vector<2x8x16xf32>
    "tpu.trace_stop"() : () -> ()
    %203 = vector.shape_cast %202 : vector<2x8x16xf32> to vector<16x16xf32>
    %204 = tpu.concatenate %56, %77, %98, %119, %140, %161, %182, %203 in 1 : vector<16x16xf32>, vector<16x16xf32>, vector<16x16xf32>, vector<16x16xf32>, vector<16x16xf32>, vector<16x16xf32>, vector<16x16xf32>, vector<16x16xf32> -> vector<16x128xf32>
    %205 = arith.truncf %204 : vector<16x128xf32> to vector<16x128xbf16>
    %c0_57 = arith.constant 0 : index
    %c0_58 = arith.constant 0 : index
    %c0_59 = arith.constant 0 : index
    %206 = vector.load %arg5[%c0_57, %c0_58, %c0_59] : memref<1x128x128xbf16, #tpu.memory_space<vmem>>, vector<1x128x128xbf16>
    %207 = vector.shape_cast %206 : vector<1x128x128xbf16> to vector<128x128xbf16>
    %cst_60 = arith.constant dense<0.000000e+00> : vector<16x128xf32>
    %208 = tpu.matmul %205, %207, %cst_60 {dimension_numbers = #tpu.dot_dimension_numbers<[1], [0], [0], [1], [0, 0, 1, 1], [], []>} : vector<16x128xbf16>, vector<128x128xbf16>, vector<16x128xf32> -> vector<16x128xf32>
    %c0_61 = arith.constant 0 : index
    %c0_62 = arith.constant 0 : index
    %c0_63 = arith.constant 0 : index
    %209 = vector.load %arg6[%c0_61, %c0_62, %c0_63] : memref<1x1x128xf32, #tpu.memory_space<vmem>>, vector<1x1x128xf32>
    %210 = vector.shape_cast %209 : vector<1x1x128xf32> to vector<1x128xf32>
    %211 = vector.broadcast %210 : vector<1x128xf32> to vector<16x128xf32>
    %212 = arith.addf %208, %211 : vector<16x128xf32>
    %213 = arith.addf %3, %212 : vector<16x128xf32>
    %c0_64 = arith.constant 0 : index
    %c0_65 = arith.constant 0 : index
    %c0_66 = arith.constant 0 : index
    %214 = vector.load %arg7[%c0_64, %c0_65, %c0_66] : memref<1x1x128xf32, #tpu.memory_space<vmem>>, vector<1x1x128xf32>
    %215 = vector.shape_cast %214 : vector<1x1x128xf32> to vector<1x128xf32>
    %c0_67 = arith.constant 0 : index
    %c0_68 = arith.constant 0 : index
    %c0_69 = arith.constant 0 : index
    %216 = vector.load %arg8[%c0_67, %c0_68, %c0_69] : memref<1x1x128xf32, #tpu.memory_space<vmem>>, vector<1x1x128xf32>
    %217 = vector.shape_cast %216 : vector<1x1x128xf32> to vector<1x128xf32>
    %cst_70 = arith.constant dense<0.000000e+00> : vector<16xf32>
    %218 = vector.multi_reduction <add>, %213, %cst_70 [1] : vector<16x128xf32> to vector<16xf32>
    %219 = vector.shape_cast %218 : vector<16xf32> to vector<16x1xf32>
    %cst_71 = arith.constant 3.125000e-02 : f32
    %220 = vector.broadcast %cst_71 : f32 to vector<16x1xf32>
    %221 = arith.mulf %219, %220 : vector<16x1xf32>
    %222 = arith.mulf %213, %213 : vector<16x128xf32>
    %cst_72 = arith.constant dense<0.000000e+00> : vector<16xf32>
    %223 = vector.multi_reduction <add>, %222, %cst_72 [1] : vector<16x128xf32> to vector<16xf32>
    %224 = vector.shape_cast %223 : vector<16xf32> to vector<16x1xf32>
    %cst_73 = arith.constant 3.125000e-02 : f32
    %225 = vector.broadcast %cst_73 : f32 to vector<16x1xf32>
    %226 = arith.mulf %224, %225 : vector<16x1xf32>
    %227 = arith.mulf %221, %221 : vector<16x1xf32>
    %228 = arith.subf %226, %227 : vector<16x1xf32>
    %cst_74 = arith.constant 0.000000e+00 : f32
    %229 = vector.broadcast %cst_74 : f32 to vector<16x1xf32>
    %230 = arith.maximumf %228, %229 : vector<16x1xf32>
    %231 = vector.broadcast %221 : vector<16x1xf32> to vector<16x128xf32>
    %232 = arith.subf %213, %231 : vector<16x128xf32>
    %cst_75 = arith.constant 9.99999974E-6 : f32
    %233 = vector.broadcast %cst_75 : f32 to vector<16x1xf32>
    %234 = arith.addf %230, %233 : vector<16x1xf32>
    %235 = math.rsqrt %234 : vector<16x1xf32>
    %236 = vector.broadcast %235 : vector<16x1xf32> to vector<16x128xf32>
    %237 = arith.mulf %232, %236 : vector<16x128xf32>
    %238 = vector.broadcast %215 : vector<1x128xf32> to vector<16x128xf32>
    %239 = arith.mulf %237, %238 : vector<16x128xf32>
    %240 = vector.broadcast %217 : vector<1x128xf32> to vector<16x128xf32>
    %241 = arith.addf %239, %240 : vector<16x128xf32>
    %242 = arith.truncf %241 : vector<16x128xf32> to vector<16x128xbf16>
    %c0_76 = arith.constant 0 : index
    %c0_77 = arith.constant 0 : index
    %c0_78 = arith.constant 0 : index
    %243 = vector.load %arg9[%c0_76, %c0_77, %c0_78] : memref<1x128x256xbf16, #tpu.memory_space<vmem>>, vector<1x128x256xbf16>
    %244 = vector.shape_cast %243 : vector<1x128x256xbf16> to vector<128x256xbf16>
    %cst_79 = arith.constant dense<0.000000e+00> : vector<16x256xf32>
    %245 = tpu.matmul %242, %244, %cst_79 {dimension_numbers = #tpu.dot_dimension_numbers<[1], [0], [0], [1], [0, 0, 1, 1], [], []>} : vector<16x128xbf16>, vector<128x256xbf16>, vector<16x256xf32> -> vector<16x256xf32>
    %c0_80 = arith.constant 0 : index
    %c0_81 = arith.constant 0 : index
    %c0_82 = arith.constant 0 : index
    %246 = vector.load %arg10[%c0_80, %c0_81, %c0_82] : memref<1x1x256xf32, #tpu.memory_space<vmem>>, vector<1x1x256xf32>
    %247 = vector.shape_cast %246 : vector<1x1x256xf32> to vector<1x256xf32>
    %248 = vector.broadcast %247 : vector<1x256xf32> to vector<16x256xf32>
    %249 = arith.addf %245, %248 : vector<16x256xf32>
    %250 = vector.extract_strided_slice %249 {offsets = [0, 0], sizes = [16, 128], strides = [1, 1]} : vector<16x256xf32> to vector<16x128xf32>
    %251 = vector.extract_strided_slice %249 {offsets = [0, 128], sizes = [16, 128], strides = [1, 1]} : vector<16x256xf32> to vector<16x128xf32>
    %cst_83 = arith.constant 5.000000e-01 : f32
    %252 = vector.broadcast %cst_83 : f32 to vector<16x128xf32>
    %253 = arith.mulf %252, %251 : vector<16x128xf32>
    %cst_84 = arith.constant 4.471500e-02 : f32
    %254 = vector.broadcast %cst_84 : f32 to vector<16x128xf32>
    %255 = arith.mulf %254, %251 : vector<16x128xf32>
    %256 = arith.mulf %255, %251 : vector<16x128xf32>
    %257 = arith.mulf %256, %251 : vector<16x128xf32>
    %258 = arith.addf %251, %257 : vector<16x128xf32>
    %cst_85 = arith.constant 0.797884583 : f32
    %259 = vector.broadcast %cst_85 : f32 to vector<16x128xf32>
    %260 = arith.mulf %259, %258 : vector<16x128xf32>
    %261 = math.tanh %260 : vector<16x128xf32>
    %cst_86 = arith.constant 1.000000e+00 : f32
    %262 = vector.broadcast %cst_86 : f32 to vector<16x128xf32>
    %263 = arith.addf %262, %261 : vector<16x128xf32>
    %264 = arith.mulf %253, %263 : vector<16x128xf32>
    %265 = arith.mulf %250, %264 : vector<16x128xf32>
    %266 = arith.truncf %265 : vector<16x128xf32> to vector<16x128xbf16>
    %c0_87 = arith.constant 0 : index
    %c0_88 = arith.constant 0 : index
    %c0_89 = arith.constant 0 : index
    %267 = vector.load %arg11[%c0_87, %c0_88, %c0_89] : memref<1x128x128xbf16, #tpu.memory_space<vmem>>, vector<1x128x128xbf16>
    %268 = vector.shape_cast %267 : vector<1x128x128xbf16> to vector<128x128xbf16>
    %cst_90 = arith.constant dense<0.000000e+00> : vector<16x128xf32>
    %269 = tpu.matmul %266, %268, %cst_90 {dimension_numbers = #tpu.dot_dimension_numbers<[1], [0], [0], [1], [0, 0, 1, 1], [], []>} : vector<16x128xbf16>, vector<128x128xbf16>, vector<16x128xf32> -> vector<16x128xf32>
    %c0_91 = arith.constant 0 : index
    %c0_92 = arith.constant 0 : index
    %c0_93 = arith.constant 0 : index
    %270 = vector.load %arg12[%c0_91, %c0_92, %c0_93] : memref<1x1x128xf32, #tpu.memory_space<vmem>>, vector<1x1x128xf32>
    %271 = vector.shape_cast %270 : vector<1x1x128xf32> to vector<1x128xf32>
    %272 = vector.broadcast %271 : vector<1x128xf32> to vector<16x128xf32>
    %273 = arith.addf %269, %272 : vector<16x128xf32>
    %274 = arith.addf %213, %273 : vector<16x128xf32>
    %c0_94 = arith.constant 0 : index
    %c0_95 = arith.constant 0 : index
    %275 = vector.load %arg14[%c0_94, %c0_95] : memref<16x128xf32, #tpu.memory_space<vmem>>, vector<16x128xf32>
    tpu.vector_store %arg14[%c0_94, %c0_95], %274 {strides = array<i32>} : memref<16x128xf32, #tpu.memory_space<vmem>>, vector<16x128xf32>,
    %276 = vector.shape_cast %274 : vector<16x128xf32> to vector<2x8x128xf32>
    %c0_96 = arith.constant 0 : index
    %c0_97 = arith.constant 0 : index
    %c0_98 = arith.constant 0 : index
    %277 = vector.load %arg13[%c0_96, %c0_97, %c0_98] : memref<2x8x128xf32, #tpu.memory_space<vmem>>, vector<2x8x128xf32>
    tpu.vector_store %arg13[%c0_96, %c0_97, %c0_98], %276 {strides = array<i32>} : memref<2x8x128xf32, #tpu.memory_space<vmem>>, vector<2x8x128xf32>,
    return
  }
  func.func @transform_0(%arg0: i32) -> (i32, i32, i32) {
    %c0_i32 = arith.constant 0 : i32
    %c0_i32_0 = arith.constant 0 : i32
    %c0_i32_1 = arith.constant 0 : i32
    %c0_i32_2 = arith.constant 0 : i32
    return %c0_i32, %c0_i32_0, %c0_i32_1 : i32, i32, i32
  }
  func.func @transform_1(%arg0: i32) -> (i32, i32, i32) {
    %c0_i32 = arith.constant 0 : i32
    %c0_i32_0 = arith.constant 0 : i32
    %c0_i32_1 = arith.constant 0 : i32
    return %arg0, %c0_i32, %c0_i32_0 : i32, i32, i32
  }
  func.func @transform_2(%arg0: i32) -> (i32, i32, i32) {
    %c0_i32 = arith.constant 0 : i32
    %c0_i32_0 = arith.constant 0 : i32
    %c0_i32_1 = arith.constant 0 : i32
    return %arg0, %c0_i32, %c0_i32_0 : i32, i32, i32
  }
  func.func @transform_3(%arg0: i32) -> (i32, i32, i32) {
    %c0_i32 = arith.constant 0 : i32
    %c0_i32_0 = arith.constant 0 : i32
    %c0_i32_1 = arith.constant 0 : i32
    return %arg0, %c0_i32, %c0_i32_0 : i32, i32, i32
  }
  func.func @transform_4(%arg0: i32) -> (i32, i32, i32) {
    %c0_i32 = arith.constant 0 : i32
    %c0_i32_0 = arith.constant 0 : i32
    %c0_i32_1 = arith.constant 0 : i32
    return %arg0, %c0_i32, %c0_i32_0 : i32, i32, i32
  }
  func.func @transform_5(%arg0: i32) -> (i32, i32, i32) {
    %c0_i32 = arith.constant 0 : i32
    %c0_i32_0 = arith.constant 0 : i32
    %c0_i32_1 = arith.constant 0 : i32
    return %arg0, %c0_i32, %c0_i32_0 : i32, i32, i32
  }
  func.func @transform_6(%arg0: i32) -> (i32, i32, i32) {
    %c0_i32 = arith.constant 0 : i32
    %c0_i32_0 = arith.constant 0 : i32
    %c0_i32_1 = arith.constant 0 : i32
    return %arg0, %c0_i32, %c0_i32_0 : i32, i32, i32
  }
  func.func @transform_7(%arg0: i32) -> (i32, i32, i32) {
    %c0_i32 = arith.constant 0 : i32
    %c0_i32_0 = arith.constant 0 : i32
    %c0_i32_1 = arith.constant 0 : i32
    return %arg0, %c0_i32, %c0_i32_0 : i32, i32, i32
  }
  func.func @transform_8(%arg0: i32) -> (i32, i32, i32) {
    %c0_i32 = arith.constant 0 : i32
    %c0_i32_0 = arith.constant 0 : i32
    %c0_i32_1 = arith.constant 0 : i32
    return %arg0, %c0_i32, %c0_i32_0 : i32, i32, i32
  }
  func.func @transform_9(%arg0: i32) -> (i32, i32, i32) {
    %c0_i32 = arith.constant 0 : i32
    %c0_i32_0 = arith.constant 0 : i32
    %c0_i32_1 = arith.constant 0 : i32
    return %arg0, %c0_i32, %c0_i32_0 : i32, i32, i32
  }
  func.func @transform_10(%arg0: i32) -> (i32, i32, i32) {
    %c0_i32 = arith.constant 0 : i32
    %c0_i32_0 = arith.constant 0 : i32
    %c0_i32_1 = arith.constant 0 : i32
    return %arg0, %c0_i32, %c0_i32_0 : i32, i32, i32
  }
  func.func @transform_11(%arg0: i32) -> (i32, i32, i32) {
    %c0_i32 = arith.constant 0 : i32
    %c0_i32_0 = arith.constant 0 : i32
    %c0_i32_1 = arith.constant 0 : i32
    return %arg0, %c0_i32, %c0_i32_0 : i32, i32, i32
  }
  func.func @transform_12(%arg0: i32) -> (i32, i32, i32) {
    %c0_i32 = arith.constant 0 : i32
    %c0_i32_0 = arith.constant 0 : i32
    %c0_i32_1 = arith.constant 0 : i32
    %c0_i32_2 = arith.constant 0 : i32
    return %c0_i32, %c0_i32_0, %c0_i32_1 : i32, i32, i32
  }
}

</mosaic_0001>

<bundles_post_ra>
// kernel: tpu_custom_call.1
= control target key start
LH: loop header
LB: loop body
LE: loop exit
PB: predicated region body
PF: predicated region fallthrough
CT: control target
= control target key end

     0   :  { %s6298_s0 = inlined_call_operand.hbm [shape: f32[2,8,128], index: 0, kind: input, shape index: {}]   ;;  %s6299_s1 = inlined_call_operand.vmem [shape: f32[2,1,128], index: 1, kind: input, shape index: {}]   ;;  %s6300_s2 = inlined_call_operand.hbm [shape: f32[2,1,128], index: 2, kind: input, shape index: {}]   ;;  %s6301_s3 = inlined_call_operand.hbm [shape: bf16[2,128,384], index: 3, kind: input, shape index: {}]   ;;  %s6302_s4 = inlined_call_operand.hbm [shape: bf16[2,128,128], index: 4, kind: input, shape index: {}]   ;;  %s6303_s5 = inlined_call_operand.vmem [shape: f32[2,1,128], index: 5, kind: input, shape index: {}]   ;;  %s6304_s6 = inlined_call_operand.vmem [shape: f32[2,1,128], index: 6, kind: input, shape index: {}]   ;;  %s6305_s7 = inlined_call_operand.vmem [shape: f32[2,1,128], index: 7, kind: input, shape index: {}]   ;;  %s6306_s8 = inlined_call_operand.hbm [shape: bf16[2,128,256], index: 8, kind: input, shape index: {}]   ;;  %s6307_s9 = inlined_call_operand.vmem [shape: f32[2,1,256], index: 9, kind: input, shape index: {}]   ;;  %s6308_s10 = inlined_call_operand.hbm [shape: bf16[2,128,128], index: 10, kind: input, shape index: {}]   ;;  %s6309_s11 = inlined_call_operand.vmem [shape: f32[2,1,128], index: 11, kind: input, shape index: {}]   ;;  %s6310_s12 = inlined_call_operand.hbm [shape: f32[2,8,128], index: 12, kind: output, shape index: {}]  }
   0x1   :  { %6326 = sst [smem:[#allocation23_spill]] %s6298_s0 }
   0x2   :  { %6327 = sst [smem:[#allocation24_spill]] %s6300_s2 }
   0x3   :  { %6328 = sst [smem:[#allocation25_spill]] %s6301_s3 }
   0x4   :  { %6329 = sst [smem:[#allocation26_spill]] %s6302_s4 }
   0x5   :  { %6330 = sst [smem:[#allocation27_spill]] %s6303_s5 }
   0x6   :  { %6331 = sst [smem:[#allocation28_spill]] %s6304_s6 }
   0x7   :  { %6332 = sst [smem:[#allocation29_spill]] %s6305_s7 }
   0x8   :  { %6333 = sst [smem:[#allocation30_spill]] %s6306_s8 }
   0x9   :  { %6334 = sst [smem:[#allocation31_spill]] %s6307_s9 }
   0xa   :  { %6335 = sst [smem:[#allocation32_spill]] %s6309_s11 }
   0xb   :  { %6336 = sst [smem:[#allocation33_spill]] %s6310_s12 }
   0xc   :  { %17 = vsyncpa [#allocation4], 0 }
   0xd   :  { %18 = vsyncpa [#allocation7], 0 }
   0xe   :  { %20 = vsyncpa [#allocation7 + $0x1], 0 }
   0xf   :  { %21 = vsyncpa [#allocation10], 0 }
  0x10   :  { %23 = vsyncpa [#allocation10 + $0x1], 0 }
  0x11   :  { %24 = vsyncpa [#allocation13], 0 }
  0x12   :  { %26 = vsyncpa [#allocation13 + $0x1], 0 }
  0x13   :  { %27 = vsyncpa [#allocation5], 0  ;;  %s5440_s21 = smov 0   ;;  %s5442_s22 = smov 0  }
  0x14   :  { %s5444_s23 = smov 0   ;;  %s5446_s24 = smov 0  }
  0x15 LB: > { %6337 = sst [smem:[#allocation20_spill]] %s5344_s23  ;;  %s5461_s25 = sadd.s32 1, %s5348_s24   ;;  %s5348_s24 = sphi %s5446_s24, %s6375_s24   ;;  %s5344_s23 = sphi %s5444_s23, %s6377_s23   ;;  %s5340_s22 = sphi %s5442_s22, %s6379_s22   ;;  %s5336_s21 = sphi %s5440_s21, %s6378_s21  }
  0x16   : > { %6338 = sst [smem:[#allocation21_spill]] %s5461_s25  ;;  %s87_s26 = sadd.s32 1, %s5344_s23 }
  0x17   : > { %s84_s27 = ssub.s32 %s5348_s24, %s5461_s25  ;;  %p94_p0 = scmp.ne.s32.totalorder %s5344_s23, %s5340_s22 }
  0x18   : > { %p85_p1 = scmp.eq.s32.totalorder %s84_s27, 0  ;;  %p95_p2 = scmp.eq.s32.totalorder %s5348_s24, 0 }
  0x19   : > { %p4853_p3 = scmp.lt.s32.totalorder %s5348_s24, 2  ;;  %s6311_s29 = sand.u32 1, %s5348_s24  }
  0x1a   : > { %s5471_s28 = scalar_select %p85_p1, %s5344_s23, %s87_s26  }
  0x1b   : > { %p96_p4 = por %p95_p2, %p94_p0  ;;  %s5475_s30 = sand.u32 1, %s5344_s23  }
  0x1c   : > { %6339 = sst [smem:[#allocation22_spill]] %s5471_s28  ;;  %s4365_s13 = sshll.u32 %s5348_s24, 4 }
  0x1d   : > { %s6340_s2 = sld [smem:[#allocation24_spill]]  ;;  %s401_s17 = scalar_lea.vmem [#allocation6], %s5475_s30 }
  0x1e   : > { %s408_s18 = sshll.u32 %s401_s17, 4  ;;  %p5486_p5 = pnand %p4853_p3, %p96_p4  ;;  %s5484_s18 = int_to_ptr.vmem [resolvable:$true] %s408_s18 }
  0x1f   : > { %s5493_s26 = scalar_lea.sflag [#allocation7], %s6311_s29 }
  0x20   : > { %s6341_s19 = scalar_select %p5486_p5, 1, 0 }
  0x21   : > { %p5499_p7 = pneg %p5486_p5 }
  0x23   : > { %s5481_s16 = scalar_lea.hbm %s6340_s2, %s4365_s13  ;;  %s5099_s17 = scalar_lea.hbm %s6340_s2, 32 }
  0x24   : > { %s5094_s27 = scalar_lea.hbm %s5481_s16, 16  ;;  %p5100_p10 = scmp.lt.u32.totalorder %s5481_s16, %s6340_s2 }
  0x25   : > { %p5095_p6 = scmp.ne.s32.totalorder %s5481_s16, %s5094_s27  ;;  %p5101_p11 = scmp.lt.u32.totalorder %s5099_s17, %s5094_s27 }
  0x26   : > { %s6342_s13 = scalar_select %p5499_p7, 1, 0 }
  0x27   : > { %p5097_p8 = pnand %p5499_p7, %p5095_p6  ;;  %p5102_p12 = por %p5101_p11, %p5100_p10 }
  0x28   : > { %p5103_p13 = scmp.lt.u32.totalorder %s5094_s27, %s5481_s16 }
  0x29   : > { %p5098_p9 = pneg %p5097_p8 }
  0x2a   : > { %p5104_p0 = por %p5103_p13, %p5102_p12 }
  0x2c   : > { %p5105_p1 = pnand %p5104_p0, %p5098_p9 }
  0x2e   : > { %5108 = shalt.err (!%p5105_p1)
}
  0x2f   : > { %s5109_s29 = scalar_lea.vmem %s5484_s18, 16  ;;  %s5350_s14 = smov [#allocation6]  }
  0x30   : > { %p5110_p2 = scmp.ne.s32.totalorder %s5484_s18, %s5109_s29  ;;  %s5114_s15 = sshll.u32 %s5350_s14, 4  ;;  %s5115_s15 = int_to_ptr.vmem [resolvable:$false] %s5114_s15 }
  0x31   : > { %s5116_s28 = scalar_lea.vmem %s5115_s15, 32  ;;  %p5117_p6 = scmp.lt.s32.totalorder %s5484_s18, %s5115_s15 }
  0x32   : > { %p5112_p3 = pnand %p5110_p2, %p5499_p7  ;;  %p5118_p8 = scmp.lt.s32.totalorder %s5116_s28, %s5109_s29 }
  0x34   : > { %p5113_p4 = pneg %p5112_p3  ;;  %p5119_p10 = por %p5118_p8, %p5117_p6 }
  0x36   : > { %p5120_p11 = pnand %p5119_p10, %p5113_p4 }
  0x38   : > { %5123 = shalt.err (!%p5120_p11)
}
  0x39   : > { %4839 = dma.hbm_to_vmem [thread:$0]  (!%p5486_p5), %s5481_s16, 16, %s5484_s18, %s5493_s26  }
  0x3a   : > { %s6315_s20 = sshll.u32 %s5348_s24, 10  ;;  %s6343_s27 = sshll.u32 %s5475_s30, 6 }
  0x3b   : > { %s440_s17 = scalar_lea.vmem [#allocation9], %s6343_s27  ;;  %s6344_s4 = sld [smem:[#allocation26_spill]] }
  0x3c   : > { %s447_s14 = sshll.u32 %s440_s17, 4  ;;  %s6345_s2 = sand.u32 1, %s5348_s24   ;;  %s5533_s14 = int_to_ptr.vmem [resolvable:$true] %s447_s14 }
  0x3d   : > { %s5537_s23 = scalar_lea.sflag [#allocation10], %s6345_s2 }
  0x41   : > { %s5531_s28 = scalar_lea.hbm %s6344_s4, %s6315_s20  ;;  %s5129_s17 = scalar_lea.hbm %s6344_s4, 2048 }
  0x42   : > { %s5124_s16 = scalar_lea.hbm %s5531_s28, 1024  ;;  %p5130_p0 = scmp.lt.u32.totalorder %s5531_s28, %s6344_s4 }
  0x43   : > { %p5125_p9 = scmp.ne.s32.totalorder %s5531_s28, %s5124_s16  ;;  %p5131_p1 = scmp.lt.u32.totalorder %s5129_s17, %s5124_s16 }
  0x44   : > { %p5133_p3 = scmp.lt.u32.totalorder %s5124_s16, %s5531_s28 }
  0x45   : > { %p5127_p12 = pnand %p5125_p9, %p5499_p7  ;;  %p5132_p2 = por %p5131_p1, %p5130_p0 }
  0x47   : > { %p5128_p13 = pneg %p5127_p12  ;;  %p5134_p4 = por %p5133_p3, %p5132_p2 }
  0x49   : > { %p5135_p6 = pnand %p5134_p4, %p5128_p13 }
  0x4b   : > { %5138 = shalt.err (!%p5135_p6)
}
  0x4c   : > { %s5139_s2 = scalar_lea.vmem %s5533_s14, 1024  ;;  %s5351_s18 = smov [#allocation9]  }
  0x4d   : > { %p5140_p8 = scmp.ne.s32.totalorder %s5533_s14, %s5139_s2  ;;  %s5144_s27 = sshll.u32 %s5351_s18, 4  ;;  %s5145_s27 = int_to_ptr.vmem [resolvable:$false] %s5144_s27 }
  0x4e   : > { %s5146_s29 = scalar_lea.vmem %s5145_s27, 2048  ;;  %p5147_p9 = scmp.lt.s32.totalorder %s5533_s14, %s5145_s27 }
  0x4f   : > { %p5142_p10 = pnand %p5140_p8, %p5499_p7  ;;  %p5148_p12 = scmp.lt.s32.totalorder %s5146_s29, %s5139_s2 }
  0x51   : > { %p5143_p11 = pneg %p5142_p10  ;;  %p5149_p0 = por %p5148_p12, %p5147_p9 }
  0x53   : > { %p5150_p1 = pnand %p5149_p0, %p5143_p11 }
  0x55   : > { %5153 = shalt.err (!%p5150_p1)
}
  0x56   : > { %s6313_s16 = smov 64   ;;  %s6314_s17 = smov 4  }
  0x57   : > { %4845 = dma.hbm_to_vmem [thread:$0]  (!%p5486_p5), %s5531_s28, 1024, %s5533_s14, %s5537_s23, %s6313_s16, %s6313_s16, %s6314_s17  }
  0x58   : > { %s5565_s15 = sadd.s32 4294967295, %s5348_s24   ;;  %p100_p2 = scmp.ne.s32.totalorder %s5340_s22, %s5336_s21 }
  0x59   : > { %p6319_p13 = scmp.eq.s32.totalorder %s5565_s15, 0  ;;  %p4362_p3 = scmp.ge.s32.totalorder %s5348_s24, 1 }
  0x5a   : > { %p366_p4 = scmp.lt.s32.totalorder %s5348_s24, 3  ;;  %s5354_s14 = smov [#allocation3]  }
  0x5b   : > { %p5575_p8 = por %p6319_p13, %p100_p2  ;;  %s378_s28 = sshll.u32 %s5354_s14, 4  ;;  %s379_s28 = int_to_ptr.vmem [resolvable:$true] %s378_s28 }
  0x5c   : > { %p5579_p10 = pnand %p4362_p3, %p366_p4  ;;  %s4811_s27 = smul.u32 192, %s5475_s30 }
  0x5d   : > { %s6346_s2 = scalar_select %p5575_p8, 1, 0 }
  0x5e   : > { %s6347_s18 = scalar_select %p5579_p10, 1, 0 }
  0x5f   : > { %p4832_p11 = pneg %p5579_p10  ;;  %s4812_s29 = smul.u32 3072, %s5348_s24 }
  0x60   : > { %s6349_s3 = sld [smem:[#allocation25_spill]]  ;;  %s6350_s0 = sld [smem:[#allocation23_spill]] }
  0x61   : > { %p5588_p9 = pnand %p4832_p11, %p6319_p13 }
  0x63   : > { %p5156_p0 = pneg %p5588_p9 }
  0x66   : > { %s5596_s20 = scalar_lea.hbm %s6349_s3, %s4812_s29  ;;  %s5154_s14 = scalar_lea.hbm %s6350_s0, 256 }
  0x67   : > { %p5155_p12 = scmp.ne.s32.totalorder %s6350_s0, %s5154_s14  ;;  %p5161_p3 = scmp.lt.u32.totalorder %s5154_s14, %s6350_s0 }
  0x69   : > { %p5157_p1 = pnand %p5156_p0, %p5155_p12 }
  0x6b   : > { %p5158_p2 = pneg %p5157_p1 }
  0x6d   : > { %p5163_p4 = pnand %p5161_p3, %p5158_p2 }
  0x6f   : > { %5166 = shalt.err (!%p5163_p4)
}
  0x70   : > { %s5167_s16 = scalar_lea.vmem %s379_s28, 256  ;;  %p5175_p8 = scmp.lt.s32.totalorder %s379_s28, %s379_s28 }
  0x71   : > { %p5168_p11 = scmp.ne.s32.totalorder %s379_s28, %s5167_s16  ;;  %p5176_p10 = scmp.lt.s32.totalorder %s5167_s16, %s5167_s16 }
  0x73   : > { %p5170_p6 = pnand %p5168_p11, %p5156_p0  ;;  %p5177_p5 = por %p5176_p10, %p5175_p8 }
  0x75   : > { %p5171_p13 = pneg %p5170_p6 }
  0x77   : > { %p5178_p7 = pnand %p5177_p5, %p5171_p13 }
  0x79   : > { %5181 = shalt.err (!%p5178_p7)
}
  0x7a   : > { %s5355_s4 = smov 128   ;;  %s5356_s7 = smov 8  }
  0x7b   : > { %4835 = dma.hbm_to_vmem [thread:$0]  (!%p5588_p9), %s6350_s0, 256, %s379_s28, [#allocation4], %s5355_s4, %s5355_s4, %s5356_s7  }
  0x7c   : > { %s419_s12 = scalar_lea.vmem [#allocation8], %s4811_s27  ;;  %s4370_s17 = sshll.u32 %s5475_s30, 7 }
  0x7d   : > { %s426_s25 = sshll.u32 %s419_s12, 4  ;;  %s5182_s29 = scalar_lea.hbm %s5596_s20, 3072  ;;  %s5618_s25 = int_to_ptr.vmem [resolvable:$true] %s426_s25 }
  0x7e   : > { %p5183_p5 = scmp.ne.s32.totalorder %s5596_s20, %s5182_s29  ;;  %p6351_p7 = scmp.ne.s32.totalorder %s6342_s13, 0 }
  0x7f   : > { %s5187_s21 = scalar_lea.hbm %s6349_s3, 6144  ;;  %p5188_p8 = scmp.lt.u32.totalorder %s5596_s20, %s6349_s3 }
  0x80   : > { %p5185_p13 = pnand %p5183_p5, %p6351_p7  ;;  %p5189_p10 = scmp.lt.u32.totalorder %s5187_s21, %s5182_s29 }
  0x81   : > { %p5191_p12 = scmp.lt.u32.totalorder %s5182_s29, %s5596_s20 }
  0x82   : > { %p5186_p6 = pneg %p5185_p13  ;;  %p5190_p9 = por %p5189_p10, %p5188_p8 }
  0x84   : > { %p5192_p0 = por %p5191_p12, %p5190_p9 }
  0x86   : > { %p5193_p1 = pnand %p5192_p0, %p5186_p6 }
  0x88   : > { %5196 = shalt.err (!%p5193_p1)
}
  0x89   : > { %s5197_s28 = scalar_lea.vmem %s5618_s25, 3072  ;;  %s5357_s27 = smov [#allocation8]  }
  0x8a   : > { %p5198_p2 = scmp.ne.s32.totalorder %s5618_s25, %s5197_s28  ;;  %s5202_s9 = sshll.u32 %s5357_s27, 4  ;;  %s5203_s9 = int_to_ptr.vmem [resolvable:$false] %s5202_s9 }
  0x8b   : > { %s5204_s5 = scalar_lea.vmem %s5203_s9, 6144  ;;  %p5205_p11 = scmp.lt.s32.totalorder %s5618_s25, %s5203_s9 }
  0x8c   : > { %p5200_p3 = pnand %p5198_p2, %p6351_p7  ;;  %p5206_p5 = scmp.lt.s32.totalorder %s5204_s5, %s5197_s28 }
  0x8e   : > { %p5201_p4 = pneg %p5200_p3  ;;  %p5207_p13 = por %p5206_p5, %p5205_p11 }
  0x90   : > { %p5208_p8 = pnand %p5207_p13, %p5201_p4 }
  0x92   : > { %5211 = shalt.err (!%p5208_p8)
}
  0x93   : > { %s5358_s6 = smov 192   ;;  %s5359_s11 = smov 12  }
  0x94   : > { %p6352_p6 = scmp.ne.s32.totalorder %s6341_s19, 0  ;;  %s4498_s12 = sshll.u32 %s5348_s24, 11 }
  0x95   : > { %s479_s29 = scalar_lea.vmem [#allocation11], %s4370_s17  ;;  %s6353_s8 = sld [smem:[#allocation30_spill]] }
  0x96   : > { %4842 = dma.hbm_to_vmem [thread:$0]  (!%p6352_p6), %s5596_s20, 3072, %s5618_s25, %s5493_s26, %s5358_s6, %s5358_s6, %s5359_s11  }
  0x97   : > { %s486_s14 = sshll.u32 %s479_s29, 4  ;;  %s5650_s14 = int_to_ptr.vmem [resolvable:$true] %s486_s14 }
  0x9b   : > { %s5648_s28 = scalar_lea.hbm %s6353_s8, %s4498_s12  ;;  %s5217_s25 = scalar_lea.hbm %s6353_s8, 4096 }
  0x9c   : > { %s5212_s27 = scalar_lea.hbm %s5648_s28, 2048  ;;  %p5218_p0 = scmp.lt.u32.totalorder %s5648_s28, %s6353_s8 }
  0x9d   : > { %p5213_p10 = scmp.ne.s32.totalorder %s5648_s28, %s5212_s27  ;;  %p5219_p1 = scmp.lt.u32.totalorder %s5217_s25, %s5212_s27 }
  0x9e   : > { %p5221_p3 = scmp.lt.u32.totalorder %s5212_s27, %s5648_s28 }
  0x9f   : > { %p5215_p9 = pnand %p5213_p10, %p6351_p7  ;;  %p5220_p2 = por %p5219_p1, %p5218_p0 }
  0xa1   : > { %p5216_p12 = pneg %p5215_p9  ;;  %p5222_p4 = por %p5221_p3, %p5220_p2 }
  0xa3   : > { %p5223_p11 = pnand %p5222_p4, %p5216_p12 }
  0xa5   : > { %5226 = shalt.err (!%p5223_p11)
}
  0xa6   : > { %s5227_s5 = scalar_lea.vmem %s5650_s14, 2048  ;;  %s5360_s6 = smov [#allocation11]  }
  0xa7   : > { %p5228_p5 = scmp.ne.s32.totalorder %s5650_s14, %s5227_s5  ;;  %s5232_s11 = sshll.u32 %s5360_s6, 4  ;;  %s5233_s11 = int_to_ptr.vmem [resolvable:$false] %s5232_s11 }
  0xa8   : > { %s5234_s12 = scalar_lea.vmem %s5233_s11, 4096  ;;  %p5235_p10 = scmp.lt.s32.totalorder %s5650_s14, %s5233_s11 }
  0xa9   : > { %p5230_p13 = pnand %p5228_p5, %p6351_p7  ;;  %p5236_p9 = scmp.lt.s32.totalorder %s5234_s12, %s5227_s5 }
  0xab   : > { %p5231_p8 = pneg %p5230_p13  ;;  %p5237_p0 = por %p5236_p9, %p5235_p10 }
  0xad   : > { %p5238_p1 = pnand %p5237_p0, %p5231_p8 }
  0xaf   : > { %5241 = shalt.err (!%p5238_p1)
}
  0xb0   : > { %4848 = dma.hbm_to_vmem [thread:$0]  (!%p6352_p6), %s5648_s28, 2048, %s5650_s14, %s5537_s23, %s5355_s4, %s5355_s4, %s5356_s7  }
  0xb1   : > { %s6354_s29 = sshll.u32 %s5348_s24, 10  ;;  %s6355_s26 = sshll.u32 %s5475_s30, 6 }
  0xb2   : > { %s5682_s27 = scalar_lea.hbm %s6308_s10, %s6354_s29  ;;  %s507_s20 = scalar_lea.vmem [#allocation12], %s6355_s26 }
  0xb3   : > { %s514_s25 = sshll.u32 %s507_s20, 4  ;;  %s504_s17 = scalar_lea.sflag [#allocation13], %s5475_s30  ;;  %s5686_s25 = int_to_ptr.vmem [resolvable:$true] %s514_s25 }
  0xb4   : > { %s5242_s9 = scalar_lea.hbm %s5682_s27, 1024  ;;  %s5247_s4 = scalar_lea.hbm %s6308_s10, 2048 }
  0xb5   : > { %p5243_p12 = scmp.ne.s32.totalorder %s5682_s27, %s5242_s9  ;;  %p5248_p4 = scmp.lt.u32.totalorder %s5682_s27, %s6308_s10 }
  0xb6   : > { %p5249_p11 = scmp.lt.u32.totalorder %s5247_s4, %s5242_s9  ;;  %p5251_p13 = scmp.lt.u32.totalorder %s5242_s9, %s5682_s27 }
  0xb7   : > { %p5245_p2 = pnand %p5243_p12, %p6351_p7 }
  0xb8   : > { %p5250_p5 = por %p5249_p11, %p5248_p4 }
  0xb9   : > { %p5246_p3 = pneg %p5245_p2 }
  0xba   : > { %p5252_p8 = por %p5251_p13, %p5250_p5 }
  0xbc   : > { %p5253_p10 = pnand %p5252_p8, %p5246_p3 }
  0xbe   : > { %5256 = shalt.err (!%p5253_p10)
}
  0xbf   : > { %s5257_s28 = scalar_lea.vmem %s5686_s25, 1024  ;;  %s5361_s5 = smov [#allocation12]  }
  0xc0   : > { %p5258_p9 = scmp.ne.s32.totalorder %s5686_s25, %s5257_s28  ;;  %s5262_s6 = sshll.u32 %s5361_s5, 4  ;;  %s5263_s6 = int_to_ptr.vmem [resolvable:$false] %s5262_s6 }
  0xc1   : > { %s5264_s11 = scalar_lea.vmem %s5263_s6, 2048  ;;  %p5265_p12 = scmp.lt.s32.totalorder %s5686_s25, %s5263_s6 }
  0xc2   : > { %p5260_p0 = pnand %p5258_p9, %p6351_p7  ;;  %p5266_p2 = scmp.lt.s32.totalorder %s5264_s11, %s5257_s28 }
  0xc4   : > { %p5261_p1 = pneg %p5260_p0  ;;  %p5267_p4 = por %p5266_p2, %p5265_p12 }
  0xc6   : > { %p5268_p11 = pnand %p5267_p4, %p5261_p1 }
  0xc8   : > { %5271 = shalt.err (!%p5268_p11)
}
  0xc9   : > { %s6356_s12 = smov 4   ;;  %s6357_s29 = smov 64  }
  0xca   : > { %4851 = dma.hbm_to_vmem [thread:$0]  (!%p6352_p6), %s5682_s27, 1024, %s5686_s25, %s504_s17, %s6357_s29, %s6357_s29, %s6356_s12  }
  0xcb   : > { %p6358_p7 = scmp.ne.s32.totalorder %s6347_s18, 0 }
  0xcc   : > { %p6359_p3 = scmp.eq.s32.totalorder (!%p6358_p7), %s5565_s15, 0 }
  0xcd   : > { %532 = sbr.rel (%p6358_p7) target bundleno = 6356 (0x18d4), region = 68 }
  0xd4   : > { %5315 = dma.done.wait (%p6359_p3), [#allocation4], 256   ;;  %p6360_p5 = pmov %p6359_p3 }
  0xd5   : > { %s538_s19 = sand.u32 1, %s5565_s15   ;;  %s5723_s13 = sand.u32 1, %s5340_s22  }
  0xd6   : > { %5317 = vsyncadd (%p6360_p5), [#allocation4], 4294967040  ;;  %s539_s30 = scalar_lea.sflag [#allocation7], %s538_s19  ;;  %p6361_p13 = scmp.ne.s32.totalorder %s6346_s2, 0 }
  0xd8   : > { %5319 = dma.done.wait (%p6361_p13), %s539_s30, 3088  }
  0xd9   : > { %5321 = vsyncadd (%p6361_p13), %s539_s30, 4294964208  ;;  %s4813_s18 = smul.u32 192, %s5723_s13  ;;  %s4378_s21 = sshll.u32 %s5723_s13, 6 }
  0xda   : > { %s556_s26 = scalar_lea.sflag [#allocation10], %s538_s19  ;;  %s5734_s20 = scalar_lea.vmem [#allocation9], %s4378_s21 }
  0xdb   : > { %s5732_s27 = scalar_lea.vmem [#allocation8], %s4813_s18 }
  0xdc   : > { %5323 = dma.done.wait (%p6361_p13), %s556_s26, 3072  }
  0xdd   : > { %5325 = vsyncadd (%p6361_p13), %s556_s26, 4294964224  ;;  %s4379_s25 = sshll.u32 %s5723_s13, 7  ;;  %s574_s9 = scalar_lea.sflag [#allocation13], %s5723_s13 }
  0xde   : > { %s5741_s17 = scalar_lea.vmem [#allocation11], %s4379_s25  ;;  %s5744_s23 = scalar_lea.vmem [#allocation12], %s4378_s21 }
  0xdf   : > { %5327 = dma.done.wait (%p6361_p13), %s574_s9, 1024  }
  0xe0   : > { %5329 = vsyncadd (%p6361_p13), %s574_s9, 4294966272  ;;  %p651_p6 = scmp.lt.s32.totalorder %s5565_s15, 1  ;;  %s6362_s6 = sld [smem:[#allocation27_spill]] }
  0xe1   : > { %s6363_s29 = sld [smem:[#allocation28_spill]]  ;;  %s6364_s21 = sld [smem:[#allocation29_spill]] }
  0xe2   : > { %s5752_s24 = scalar_select %p651_p6, %s5565_s15, 1 }
  0xe3   : > { %s6365_s7 = sld [smem:[#allocation32_spill]]  ;;  %s6366_s14 = sld [smem:[#allocation31_spill]] }
  0xe4   : > { %s4381_s25 = sshll.u32 %s5752_s24, 1  ;;  %p6367_p8 = scmp.ne.s32.totalorder %s5565_s15, 0 }
  0xe5   : > { %v675_v0 = vld [vmem:[#allocation3] sm:$0xff] (!%p6367_p8)  ;;  %v676_v1 = vld [vmem:[#allocation3 + $0x8] sm:$0xff] (!%p6367_p8) }
  0xe6   : > { %s656_s2 = scalar_lea.vmem %s6362_s6, %s5752_s24  ;;  %674 = sbr.rel (%p6367_p8) target bundleno = 237 (0xed), region = 96  ;;  %677 = vst [vmem:[#allocation2] sm:$0xff] (!%p6367_p8), %v675_v0  ;;  %678 = vst [vmem:[#allocation2 + $0x8] sm:$0xff] (!%p6367_p8), %v676_v1 }
  0xe7   : > { %s659_s19 = scalar_lea.vmem %s6363_s29, %s5752_s24  ;;  %s662_s26 = scalar_lea.vmem %s6364_s21, %s5752_s24 }
  0xe9   : > { %s669_s16 = scalar_lea.vmem %s6365_s7, %s5752_s24  ;;  %s5778_s8 = scalar_lea.vmem %s6366_s14, %s4381_s25 }
  0xed PF: > { %v5782_v2 = vld [vmem:[#allocation2] sm:$0xff]  ;;  %v5784_v3 = vld [vmem:[#allocation2 + $0x8] sm:$0xff]  ;;  %v5362_v9 = vmov 0.0   ;;  %v5363_v26 = vmov 0   ;;  %vm5364_vm0 = vmmov 0   ;;  %s6369_s14 = scalar_lea.vmem [#allocation6], %s5723_s13 }
  0xee   : > { %683 = vadd.xlane.f32.xlu0 %v5782_v2  ;;  %v689_v4 = vmul.f32 %v5782_v2, %v5782_v2  ;;  %v690_v5 = vmul.f32 %v5784_v3, %v5784_v3  ;;  %v4944_v6 = vld [vmem:[%s5732_s27 + $0x4] ss:$12 sps:$4 sm:$0xff]   ;;  %v4946_v7 = vld [vmem:[%s5732_s27] ss:$12 sps:$4 sm:$0xff]   ;;  %v4947_v8 = vld [vmem:[%s5732_s27 + $0x8] ss:$12 sps:$4 sm:$0xff]   ;;  %4591 = vmatprep.subr.bf16.mxu1 %v5362_v9 }
  0xef   : > { %888 = vmatprep.subr.bf16.mxu0 %v4944_v6  ;;  %4592 = vmatpush3.bf16.msra.mxu1 %v4947_v8  ;;  %v4948_v10 = vld [vmem:[%s5732_s27 + $0x1c] ss:$12 sps:$4 sm:$0xff]   ;;  %v4950_v11 = vld [vmem:[%s5732_s27 + $0x18] ss:$12 sps:$4 sm:$0xff]   ;;  %v4951_v12 = vld [vmem:[%s5732_s27 + $0x20] ss:$12 sps:$4 sm:$0xff]  }
  0xf0   : > { %691 = vadd.xlane.f32.xlu1 %v689_v4  ;;  %889 = vmatpush1.bf16.msra.mxu0 %v4946_v7  ;;  %v4952_v13 = vld [vmem:[%s5732_s27 + $0x34] ss:$12 sps:$4 sm:$0xff]   ;;  %v4954_v14 = vld [vmem:[%s5732_s27 + $0x30] ss:$12 sps:$4 sm:$0xff]   ;;  %v4955_v15 = vld [vmem:[%s5732_s27 + $0x38] ss:$12 sps:$4 sm:$0xff]  }
  0xf1   : > { %4593 = vmatprep.subr.bf16.mxu1 %v5362_v9  ;;  %890 = vmatprep.subr.bf16.mxu0 %v4948_v10  ;;  %v4956_v16 = vld [vmem:[%s5732_s27 + $0x4c] ss:$12 sps:$4 sm:$0xff]   ;;  %v4958_v17 = vld [vmem:[%s5732_s27 + $0x48] ss:$12 sps:$4 sm:$0xff]   ;;  %v4959_v18 = vld [vmem:[%s5732_s27 + $0x50] ss:$12 sps:$4 sm:$0xff]  }
  0xf2   : > { %685 = vadd.xlane.f32.xlu0 %v5784_v3  ;;  %v4960_v19 = vld [vmem:[%s5732_s27 + $0x64] ss:$12 sps:$4 sm:$0xff]   ;;  %v4962_v20 = vld [vmem:[%s5732_s27 + $0x60] ss:$12 sps:$4 sm:$0xff]   ;;  %v4963_v21 = vld [vmem:[%s5732_s27 + $0x68] ss:$12 sps:$4 sm:$0xff]   ;;  %920 = vmatprep.mubr.bf16.mxu0 %v5363_v26 }
  0xf3   : > { %4594 = vmatpush3.bf16.msra.mxu1 %v4951_v12  ;;  %v4964_v22 = vld [vmem:[%s5732_s27 + $0x7c] ss:$12 sps:$4 sm:$0xff]   ;;  %v4966_v23 = vld [vmem:[%s5732_s27 + $0x78] ss:$12 sps:$4 sm:$0xff]   ;;  %v4967_v24 = vld [vmem:[%s5732_s27 + $0x80] ss:$12 sps:$4 sm:$0xff]   ;;  %4607 = vmatprep.mubr.msk.bf16.mxu1 %vm5364_vm0, %v5362_v9 }
  0xf4   : > { %693 = vadd.xlane.f32.xlu1 %v690_v5  ;;  %891 = vmatpush1.bf16.msra.mxu0 %v4950_v11  ;;  %v4968_v25 = vld [vmem:[%s5732_s27 + $0x94] ss:$12 sps:$4 sm:$0xff]   ;;  %v4970_v27 = vld [vmem:[%s5732_s27 + $0x90] ss:$12 sps:$4 sm:$0xff]   ;;  %v4971_v28 = vld [vmem:[%s5732_s27 + $0x98] ss:$12 sps:$4 sm:$0xff]  }
  0xf5   : > { %4595 = vmatprep.subr.bf16.mxu1 %v5362_v9  ;;  %892 = vmatprep.subr.bf16.mxu0 %v4952_v13  ;;  %v4972_v29 = vld [vmem:[%s5732_s27 + $0xac] ss:$12 sps:$4 sm:$0xff]   ;;  %v4974_v30 = vld [vmem:[%s5732_s27 + $0xa8] ss:$12 sps:$4 sm:$0xff]   ;;  %v4975_v31 = vld [vmem:[%s5732_s27 + $0xb0] ss:$12 sps:$4 sm:$0xff]   ;;  %s6368_s27 = scalar_lea.vmem %s6299_s1, %s5752_s24 }
  0xf6   : > { %v4383_v51 = vld [vmem:[%s6368_s27] ss:$0 sm:$0xff]  ;;  %vm972_vm1 = vcmask 130048   ;;  %vm1127_vm2 = vcmask 64512   ;;  %s5365_s13 = smov 112   ;;  %s5366_s28 = smov 96  }
  0xf7   : > { %4596 = vmatpush3.bf16.msra.mxu1 %v4955_v15  ;;  %v4384_v56 = vld [vmem:[%s6369_s14] ss:$0 sm:$0xff]  ;;  %s5367_s5 = smov 80   ;;  %s5368_s6 = smov 64   ;;  %vm3680_vm3 = vcmask 261120   ;;  %vm3683_vm4 = vcmask 392192  }
  0xf8   : > { %893 = vmatpush1.bf16.msra.mxu0 %v4954_v14  ;;  %4597 = vmatprep.subr.bf16.mxu1 %v5362_v9  ;;  %s5369_s11 = smov 48   ;;  %s5370_s12 = smov 32   ;;  %vm3686_vm5 = vcmask 523264   ;;  %vm3689_vm6 = vcmask 654336   ;;  %vm3692_vm7 = vcmask 785408   ;;  %vm3695_vm8 = vcmask 916480  }
  0xf9   : > { %894 = vmatprep.subr.bf16.mxu0 %v4956_v16  ;;  %s5371_s29 = smov 16   ;;  %p4855_p10 = scmp.eq.s32.totalorder %s5565_s15, 1 }
  0xfb   : > { %4598 = vmatpush3.bf16.msra.mxu1 %v4959_v18 }
  0xfc   : > { %895 = vmatpush1.bf16.msra.mxu0 %v4958_v17  ;;  %4599 = vmatprep.subr.bf16.mxu1 %v5362_v9 }
  0xfd   : > { %896 = vmatprep.subr.bf16.mxu0 %v4960_v19 }
  0xff   : > { %4600 = vmatpush3.bf16.msra.mxu1 %v4963_v21 }
 0x100   : > { %897 = vmatpush1.bf16.msra.mxu0 %v4962_v20  ;;  %4601 = vmatprep.subr.bf16.mxu1 %v5362_v9 }
 0x101   : > { %898 = vmatprep.subr.bf16.mxu0 %v4964_v22 }
 0x103   : > { %4602 = vmatpush3.bf16.msra.mxu1 %v4967_v24 }
 0x104   : > { %899 = vmatpush1.bf16.msra.mxu0 %v4966_v23  ;;  %4603 = vmatprep.subr.bf16.mxu1 %v5362_v9 }
 0x105   : > { %900 = vmatprep.subr.bf16.mxu0 %v4968_v25 }
 0x107   : > { %4604 = vmatpush3.bf16.msra.mxu1 %v4971_v28 }
 0x108   : > { %901 = vmatpush1.bf16.msra.mxu0 %v4970_v27  ;;  %4605 = vmatprep.subr.bf16.mxu1 %v5362_v9 }
 0x109   : > { %902 = vmatprep.subr.bf16.mxu0 %v4972_v29 }
 0x10b   : > { %4606 = vmatpush3.bf16.msra.mxu1 %v4975_v31 }
 0x10c   : > { %903 = vmatpush1.bf16.msra.mxu0 %v4974_v30  ;;  %4611 = vmatprep.subr.mxu1 %v5362_v9 }
 0x10d   : > { %4651 = vmatprep.subr.mxu0 %v5362_v9 }
 0x17b   : > { %v684_v32 = vpop.xlane.xlu0 %683 }
 0x17c   : > { %v687_v33 = vmul.f32 0.03125, %v684_v32 }
 0x17d   : > { %v692_v34 = vpop.xlane.xlu1 %691 }
 0x17e   : > { %v697_v35 = vmul.f32 %v687_v33, %v687_v33  ;;  %v695_v36 = vmul.f32 0.03125, %v692_v34  ;;  %v703_v48 = vsub.f32 %v5782_v2, %v687_v33 }
 0x17f   : > { %v686_v37 = vpop.xlane.xlu0 %685 }
 0x180   : > { %v699_v38 = vsub.f32 %v695_v36, %v697_v35  ;;  %v688_v39 = vmul.f32 0.03125, %v686_v37 }
 0x181   : > { %v694_v40 = vpop.xlane.xlu1 %693 }
 0x182   : > { %v701_v41 = vmax.f32 %v699_v38, 0.0  ;;  %v698_v42 = vmul.f32 %v688_v39, %v688_v39  ;;  %v696_v43 = vmul.f32 0.03125, %v694_v40  ;;  %v704_v52 = vsub.f32 %v5784_v3, %v688_v39 }
 0x184   : > { %v705_v44 = vadd.f32 1e-05, %v701_v41  ;;  %v700_v45 = vsub.f32 %v696_v43, %v698_v42 }
 0x186   : > { %5016 = vrsqrt.f32 %v705_v44  ;;  %v702_v46 = vmax.f32 %v700_v45, 0.0 }
 0x188   : > { %v706_v47 = vadd.f32 1e-05, %v702_v46 }
 0x18a   : > { %5018 = vrsqrt.f32 %v706_v47 }
 0x190   : > { %v5017_v49 = vpop.eup %5016 }
 0x191   : > { %v709_v50 = vmul.f32 %v5017_v49, %v703_v48 }
 0x193   : > { %v717_v55 = vmul.f32 %v4383_v51, %v709_v50 }
 0x194   : > { %v5019_v53 = vpop.eup %5018 }
 0x195   : > { %v710_v54 = vmul.f32 %v5019_v53, %v704_v52  ;;  %v725_v58 = vadd.f32 %v4384_v56, %v717_v55 }
 0x197   : > { %v718_v57 = vmul.f32 %v4383_v51, %v710_v54 }
 0x199   : > { %v726_v59 = vadd.f32 %v4384_v56, %v718_v57 }
 0x19b   : > { %v727_v60 = vpack.c.bf16 %v726_v59, %v725_v58 }
 0x19d   : > { %921 = vmatmul.mubr.bf16.vlgmr.msra.gmra.mrb[0].mxu0 %v727_v60  ;;  %4608 = vmatmul.mubr.bf16.vlgmr.msra.gmra.mrb[0].mxu1 %v727_v60 }
 0x19e   : > { %4613 = vmatprep.mubr.msk.f32.mxu1 %vm5364_vm0, %v5362_v9  ;;  %4653 = vmatprep.mubr.msk.f32.mxu0 %vm5364_vm0, %v5362_v9 }
 0x270   : > { %v5842_v61 = vpop.f32.mrb[0].mxu0  ;;  %v5844_v62 = vpop.f32.mrb[0].mxu1 }
 0x271   : > { %v5846_v63 = vpop.f32.mrb[1].mxu0  ;;  %v4609_v0 = vpop.f32.mrb[1].mxu1 }
 0x272   : > { %v5848_v1 = vpop.f32.mrb[2].mxu0  ;;  %v5850_v2 = vpop.f32.mrb[2].mxu1  ;;  %4612 = vmatpush3.xpose.msk.msra.mxu1 %vm972_vm1, %v5846_v63 }
 0x273   : > { %v5854_v3 = vpop.f32.mrb[3].mxu0  ;;  %v4610_v4 = vpop.f32.mrb[3].mxu1  ;;  %4616 = vmatprep.subr.mxu1 %v5362_v9 }
 0x275   : > { %4614 = vmatmul.mubr.msk.f32.vlgmr.msra.gmra.mrb[4].mxu1 %vm972_vm1, %v5842_v61 }
 0x276   : > { %4617 = vmatpush3.xpose.msk.msra.mxu1 %vm972_vm1, %v5854_v3  ;;  %4618 = vmatprep.mubr.msk.f32.mxu1 %vm5364_vm0, %v5362_v9 }
 0x277   : > { %4621 = vmatprep.subr.mxu1 %v5362_v9 }
 0x279   : > { %4619 = vmatmul.mubr.msk.f32.vlgmr.msra.gmra.mrb[6].mxu1 %vm972_vm1, %v5848_v1 }
 0x27a   : > { %4622 = vmatpush3.msra.mxu1 %v5844_v62  ;;  %4623 = vmatprep.mubr.msk.f32.mxu1 %vm5364_vm0, %v5362_v9 }
 0x27b   : > { %4626 = vmatprep.subr.mxu1 %v5362_v9 }
 0x348   : > { %v1045_v5 = vpop.f32.mrb[4].mxu1 }
 0x349   : > { %v1125_v6 = vmul.f32 0.25, %v1045_v5  ;;  %v4615_v7 = vpop.f32.mrb[5].mxu1 }
 0x34b   : > { %v1128_v8 = vsel %vm1127_vm2, %v1125_v6, -inf }
 0x34c   : > { %1129 = vmax.xlane.f32.xlu0 %v1128_v8  ;;  %v1121_v10 = vpop.f32.mrb[6].mxu1 }
 0x34d   : > { %v1126_v11 = vmul.f32 0.25, %v1121_v10  ;;  %v4620_v12 = vpop.f32.mrb[7].mxu1 }
 0x34f   : > { %v1131_v13 = vsel %vm1127_vm2, %v1126_v11, -inf }
 0x350   : > { %1132 = vmax.xlane.f32.xlu1 %v1131_v13 }
 0x361   : > { %1296 = vrot.lane.b32.xlu1 %v5842_v61, %s5365_s13 }
 0x3d9   : > { %v1130_v14 = vpop.xlane.xlu0 %1129 }
 0x3da   : > { %v1134_v15 = vsub.f32 %v1125_v6, %v1130_v14 }
 0x3dc   : > { %v1136_v16 = vmul.f32 1.442695, %v1134_v15 }
 0x3dd   : > { %v1133_v17 = vpop.xlane.xlu1 %1132 }
 0x3de   : > { %5020 = vpow2.f32 %v1136_v16  ;;  %v1135_v18 = vsub.f32 %v1126_v11, %v1133_v17 }
 0x3e0   : > { %v1138_v19 = vmul.f32 1.442695, %v1135_v18 }
 0x3e1   : > { %v1297_v24 = vpop.permute.xlu1 %1296 }
 0x3e2   : > { %5022 = vpow2.f32 %v1138_v19 }
 0x3e8   : > { %v5021_v20 = vpop.eup %5020 }
 0x3e9   : > { %v1140_v21 = vsel %vm1127_vm2, %v5021_v20, 0.0 }
 0x3ea   : > { %1141 = vadd.xlane.f32.xlu0 %v1140_v21 }
 0x3ec   : > { %v5023_v22 = vpop.eup %5022 }
 0x3ed   : > { %v1143_v23 = vsel %vm1127_vm2, %v5023_v22, 0.0 }
 0x3ee   : > { %1144 = vadd.xlane.f32.xlu1 %v1143_v23 }
 0x3ff   : > { %1376 = vrot.lane.b32.xlu1 %v5854_v3, %s5365_s13 }
 0x400   : > { %1298 = vrot.lane.b32.xlu0 %v5846_v63, %s5365_s13 }
 0x403   : > { %1374 = vrot.lane.b32.xlu1 %v5848_v1, %s5365_s13 }
 0x477   : > { %v1142_v25 = vpop.xlane.xlu0 %1141 }
 0x478   : > { %5024 = vrcp.f32 %v1142_v25 }
 0x47b   : > { %v1145_v27 = vpop.xlane.xlu1 %1144  ;;  %v1299_v32 = vpop.permute.xlu0 %1298 }
 0x47c   : > { %5026 = vrcp.f32 %v1145_v27 }
 0x47f   : > { %v1377_v33 = vpop.permute.xlu1 %1376 }
 0x482   : > { %v5025_v28 = vpop.eup %5024 }
 0x483   : > { %v1148_v29 = vmul.f32 %v5025_v28, %v5021_v20  ;;  %v1375_v34 = vpop.permute.xlu1 %1374 }
 0x485   : > { %4624 = vmatmul.mubr.msk.f32.vlgmr.msra.gmra.mrb[8].mxu1 %vm1127_vm2, %v1148_v29 }
 0x486   : > { %v5027_v30 = vpop.eup %5026  ;;  %4627 = vmatpush3.msra.mxu1 %v5850_v2  ;;  %4628 = vmatprep.mubr.msk.f32.mxu1 %vm5364_vm0, %v5362_v9 }
 0x487   : > { %v1149_v31 = vmul.f32 %v5027_v30, %v5023_v22  ;;  %4631 = vmatprep.subr.mxu1 %v5362_v9 }
 0x489   : > { %4629 = vmatmul.mubr.msk.f32.vlgmr.msra.gmra.mrb[10].mxu1 %vm1127_vm2, %v1149_v31 }
 0x48a   : > { %4633 = vmatprep.mubr.msk.f32.mxu1 %vm5364_vm0, %v5362_v9 }
 0x48d   : > { %4632 = vmatpush3.xpose.msk.msra.mxu1 %vm972_vm1, %v1299_v32 }
 0x48e   : > { %4636 = vmatprep.subr.mxu1 %v5362_v9 }
 0x490   : > { %4634 = vmatmul.mubr.msk.f32.vlgmr.msra.gmra.mrb[12].mxu1 %vm972_vm1, %v1297_v24 }
 0x491   : > { %4637 = vmatpush3.xpose.msk.msra.mxu1 %vm972_vm1, %v1377_v33  ;;  %4638 = vmatprep.mubr.msk.f32.mxu1 %vm5364_vm0, %v5362_v9 }
 0x492   : > { %4641 = vmatprep.subr.mxu1 %v5362_v9 }
 0x494   : > { %4639 = vmatmul.mubr.msk.f32.vlgmr.msra.gmra.mrb[14].mxu1 %vm972_vm1, %v1375_v34 }
 0x495   : > { %4643 = vmatprep.mubr.msk.f32.mxu1 %vm5364_vm0, %v5362_v9 }
 0x558   : > { %v5900_v35 = vpop.f32.mrb[8].mxu1 }
 0x559   : > { %v4625_v36 = vpop.f32.mrb[9].mxu1 }
 0x55c   : > { %v5902_v37 = vpop.f32.mrb[10].mxu1 }
 0x55d   : > { %v4630_v38 = vpop.f32.mrb[11].mxu1 }
 0x563   : > { %v1370_v39 = vpop.f32.mrb[12].mxu1 }
 0x564   : > { %v1452_v40 = vmul.f32 0.25, %v1370_v39  ;;  %v4635_v41 = vpop.f32.mrb[13].mxu1 }
 0x566   : > { %v1454_v42 = vsel %vm1127_vm2, %v1452_v40, -inf }
 0x567   : > { %1455 = vmax.xlane.f32.xlu0 %v1454_v42  ;;  %v1448_v43 = vpop.f32.mrb[14].mxu1 }
 0x568   : > { %v1453_v44 = vmul.f32 0.25, %v1448_v43  ;;  %v4640_v45 = vpop.f32.mrb[15].mxu1 }
 0x56a   : > { %v1457_v46 = vsel %vm1127_vm2, %v1453_v44, -inf }
 0x56b   : > { %1458 = vmax.xlane.f32.xlu1 %v1457_v46 }
 0x57c   : > { %1554 = vrot.lane.b32.xlu1 %v5850_v2, %s5365_s13 }
 0x580   : > { %1632 = vrot.lane.b32.xlu1 %v5846_v63, %s5366_s28 }
 0x584   : > { %1710 = vrot.lane.b32.xlu1 %v5854_v3, %s5366_s28 }
 0x588   : > { %1708 = vrot.lane.b32.xlu1 %v5848_v1, %s5366_s28 }
 0x5f4   : > { %v1456_v47 = vpop.xlane.xlu0 %1455 }
 0x5f5   : > { %v1460_v48 = vsub.f32 %v1452_v40, %v1456_v47 }
 0x5f7   : > { %v1462_v49 = vmul.f32 1.442695, %v1460_v48 }
 0x5f8   : > { %v1459_v50 = vpop.xlane.xlu1 %1458 }
 0x5f9   : > { %5028 = vpow2.f32 %v1462_v49  ;;  %v1461_v55 = vsub.f32 %v1453_v44, %v1459_v50 }
 0x5fb   : > { %v1464_v56 = vmul.f32 1.442695, %v1461_v55 }
 0x5fc   : > { %v1555_v51 = vpop.permute.xlu1 %1554 }
 0x5fd   : > { %5030 = vpow2.f32 %v1464_v56 }
 0x600   : > { %v1633_v52 = vpop.permute.xlu1 %1632 }
 0x601   : > { %4652 = vmatpush3.xpose.msk.msra.mxu0 %vm972_vm1, %v1633_v52 }
 0x602   : > { %4661 = vmatprep.subr.mxu0 %v5362_v9 }
 0x603   : > { %v5029_v53 = vpop.eup %5028 }
 0x604   : > { %v1466_v54 = vsel %vm1127_vm2, %v5029_v53, 0.0  ;;  %v1711_v8 = vpop.permute.xlu1 %1710 }
 0x605   : > { %1467 = vadd.xlane.f32.xlu0 %v1466_v54 }
 0x607   : > { %v5031_v57 = vpop.eup %5030 }
 0x608   : > { %v1469_v58 = vsel %vm1127_vm2, %v5031_v57, 0.0  ;;  %v1709_v11 = vpop.permute.xlu1 %1708 }
 0x61b   : > { %1477 = vrot.lane.b32.xlu0 %v5844_v62, %s5365_s13 }
 0x63a   : > { %1470 = vadd.xlane.f32.xlu0 %v1469_v58 }
 0x650   : > { %1630 = vrot.lane.b32.xlu0 %v5842_v61, %s5366_s28 }
 0x692   : > { %v1468_v59 = vpop.xlane.xlu0 %1467 }
 0x693   : > { %5032 = vrcp.f32 %v1468_v59 }
 0x696   : > { %v1478_v60 = vpop.permute.xlu0 %1477 }
 0x697   : > { %4642 = vmatpush3.msra.mxu1 %v1478_v60 }
 0x698   : > { %4646 = vmatprep.subr.mxu1 %v5362_v9 }
 0x69d   : > { %v5033_v0 = vpop.eup %5032 }
 0x69e   : > { %v1474_v4 = vmul.f32 %v5033_v0, %v5029_v53 }
 0x6a0   : > { %4644 = vmatmul.mubr.msk.f32.vlgmr.msra.gmra.mrb[16].mxu1 %vm1127_vm2, %v1474_v4 }
 0x6a1   : > { %4647 = vmatpush3.msra.mxu1 %v1555_v51  ;;  %4648 = vmatprep.mubr.msk.f32.mxu1 %vm5364_vm0, %v5362_v9 }
 0x6a2   : > { %4656 = vmatprep.subr.mxu1 %v5362_v9 }
 0x6c7   : > { %v1471_v5 = vpop.xlane.xlu0 %1470 }
 0x6c8   : > { %5034 = vrcp.f32 %v1471_v5 }
 0x6cb   : > { %v1631_v6 = vpop.permute.xlu0 %1630 }
 0x6cc   : > { %4654 = vmatmul.mubr.msk.f32.vlgmr.msra.gmra.mrb[4].mxu0 %vm972_vm1, %v1631_v6 }
 0x6cd   : > { %4663 = vmatprep.mubr.msk.f32.mxu0 %vm5364_vm0, %v5362_v9 }
 0x6d2   : > { %v5035_v7 = vpop.eup %5034 }
 0x6d3   : > { %v1475_v10 = vmul.f32 %v5035_v7, %v5031_v57 }
 0x6d5   : > { %4649 = vmatmul.mubr.msk.f32.vlgmr.msra.gmra.mrb[18].mxu1 %vm1127_vm2, %v1475_v10 }
 0x6d6   : > { %4657 = vmatpush3.xpose.msk.msra.mxu1 %vm972_vm1, %v1711_v8  ;;  %4658 = vmatprep.mubr.msk.f32.mxu1 %vm5364_vm0, %v5362_v9 }
 0x6d7   : > { %4666 = vmatprep.subr.mxu1 %v5362_v9 }
 0x6d9   : > { %4659 = vmatmul.mubr.msk.f32.vlgmr.msra.gmra.mrb[20].mxu1 %vm972_vm1, %v1709_v11 }
 0x6da   : > { %4668 = vmatprep.mubr.msk.f32.mxu1 %vm5364_vm0, %v5362_v9 }
 0x773   : > { %v5938_v12 = vpop.f32.mrb[16].mxu1 }
 0x774   : > { %v4645_v13 = vpop.f32.mrb[17].mxu1 }
 0x79f   : > { %v1704_v14 = vpop.f32.mrb[4].mxu0 }
 0x7a0   : > { %v1786_v15 = vmul.f32 0.25, %v1704_v14  ;;  %v4655_v16 = vpop.f32.mrb[5].mxu0 }
 0x7a2   : > { %v1788_v17 = vsel %vm1127_vm2, %v1786_v15, -inf }
 0x7a3   : > { %1789 = vmax.xlane.f32.xlu0 %v1788_v17 }
 0x7a8   : > { %v5941_v18 = vpop.f32.mrb[18].mxu1 }
 0x7a9   : > { %v4909_v19 = vpack.i.bf16 %v5941_v18, %v5938_v12  ;;  %v4650_v20 = vpop.f32.mrb[19].mxu1 }
 0x7ac   : > { %v1782_v21 = vpop.f32.mrb[20].mxu1 }
 0x7ad   : > { %v1787_v22 = vmul.f32 0.25, %v1782_v21  ;;  %v4660_v23 = vpop.f32.mrb[21].mxu1 }
 0x7af   : > { %v1791_v24 = vsel %vm1127_vm2, %v1787_v22, -inf }
 0x7b0   : > { %1792 = vmax.xlane.f32.xlu1 %v1791_v24 }
 0x7c1   : > { %1886 = vrot.lane.b32.xlu1 %v5850_v2, %s5366_s28 }
 0x7c5   : > { %1964 = vrot.lane.b32.xlu1 %v5846_v63, %s5367_s5 }
 0x7c9   : > { %2042 = vrot.lane.b32.xlu1 %v5854_v3, %s5367_s5 }
 0x7cd   : > { %2040 = vrot.lane.b32.xlu1 %v5848_v1, %s5367_s5 }
 0x830   : > { %v1790_v25 = vpop.xlane.xlu0 %1789 }
 0x831   : > { %v1794_v27 = vsub.f32 %v1786_v15, %v1790_v25 }
 0x833   : > { %v1796_v28 = vmul.f32 1.442695, %v1794_v27 }
 0x835   : > { %5036 = vpow2.f32 %v1796_v28 }
 0x83d   : > { %v1793_v29 = vpop.xlane.xlu1 %1792 }
 0x83e   : > { %v1795_v33 = vsub.f32 %v1787_v22, %v1793_v29 }
 0x83f   : > { %v5037_v30 = vpop.eup %5036 }
 0x840   : > { %v1800_v31 = vsel %vm1127_vm2, %v5037_v30, 0.0  ;;  %v1798_v34 = vmul.f32 1.442695, %v1795_v33 }
 0x841   : > { %1801 = vadd.xlane.f32.xlu0 %v1800_v31  ;;  %v1887_v32 = vpop.permute.xlu1 %1886 }
 0x842   : > { %4667 = vmatpush3.msra.mxu1 %v1887_v32  ;;  %5038 = vpow2.f32 %v1798_v34 }
 0x843   : > { %4676 = vmatprep.subr.mxu1 %v5362_v9 }
 0x845   : > { %v1965_v43 = vpop.permute.xlu1 %1964 }
 0x849   : > { %v2043_v47 = vpop.permute.xlu1 %2042 }
 0x84c   : > { %v5039_v36 = vpop.eup %5038 }
 0x84d   : > { %v1803_v38 = vsel %vm1127_vm2, %v5039_v36, 0.0  ;;  %v2041_v49 = vpop.permute.xlu1 %2040 }
 0x857   : > { %1810 = vrot.lane.b32.xlu0 %v5844_v62, %s5366_s28 }
 0x876   : > { %1804 = vadd.xlane.f32.xlu0 %v1803_v38 }
 0x88c   : > { %1962 = vrot.lane.b32.xlu0 %v5842_v61, %s5367_s5 }
 0x8ce   : > { %v1802_v39 = vpop.xlane.xlu0 %1801 }
 0x8cf   : > { %5040 = vrcp.f32 %v1802_v39 }
 0x8d2   : > { %v1811_v40 = vpop.permute.xlu0 %1810 }
 0x8d3   : > { %4662 = vmatpush3.msra.mxu0 %v1811_v40 }
 0x8d4   : > { %4671 = vmatprep.subr.mxu0 %v5362_v9 }
 0x8d9   : > { %v5041_v41 = vpop.eup %5040 }
 0x8da   : > { %v1808_v42 = vmul.f32 %v5041_v41, %v5037_v30 }
 0x8dc   : > { %4664 = vmatmul.mubr.msk.f32.vlgmr.msra.gmra.mrb[6].mxu0 %vm1127_vm2, %v1808_v42 }
 0x8dd   : > { %4672 = vmatpush3.xpose.msk.msra.mxu0 %vm972_vm1, %v1965_v43  ;;  %4673 = vmatprep.mubr.msk.f32.mxu0 %vm5364_vm0, %v5362_v9 }
 0x8de   : > { %4681 = vmatprep.subr.mxu0 %v5362_v9 }
 0x903   : > { %v1805_v44 = vpop.xlane.xlu0 %1804 }
 0x904   : > { %5042 = vrcp.f32 %v1805_v44 }
 0x907   : > { %v1963_v45 = vpop.permute.xlu0 %1962 }
 0x908   : > { %4674 = vmatmul.mubr.msk.f32.vlgmr.msra.gmra.mrb[8].mxu0 %vm972_vm1, %v1963_v45 }
 0x909   : > { %4683 = vmatprep.mubr.msk.f32.mxu0 %vm5364_vm0, %v5362_v9 }
 0x90e   : > { %v5043_v46 = vpop.eup %5042 }
 0x90f   : > { %v1809_v48 = vmul.f32 %v5043_v46, %v5039_v36 }
 0x911   : > { %4669 = vmatmul.mubr.msk.f32.vlgmr.msra.gmra.mrb[22].mxu1 %vm1127_vm2, %v1809_v48 }
 0x912   : > { %4677 = vmatpush3.xpose.msk.msra.mxu1 %vm972_vm1, %v2043_v47  ;;  %4678 = vmatprep.mubr.msk.f32.mxu1 %vm5364_vm0, %v5362_v9 }
 0x913   : > { %4686 = vmatprep.subr.mxu1 %v5362_v9 }
 0x915   : > { %4679 = vmatmul.mubr.msk.f32.vlgmr.msra.gmra.mrb[24].mxu1 %vm972_vm1, %v2041_v49 }
 0x916   : > { %4688 = vmatprep.mubr.msk.f32.mxu1 %vm5364_vm0, %v5362_v9 }
 0x9af   : > { %v5978_v50 = vpop.f32.mrb[6].mxu0 }
 0x9b0   : > { %v4665_v51 = vpop.f32.mrb[7].mxu0 }
 0x9db   : > { %v2036_v52 = vpop.f32.mrb[8].mxu0 }
 0x9dc   : > { %v2118_v53 = vmul.f32 0.25, %v2036_v52  ;;  %v4675_v54 = vpop.f32.mrb[9].mxu0 }
 0x9de   : > { %v2120_v55 = vsel %vm1127_vm2, %v2118_v53, -inf }
 0x9df   : > { %2121 = vmax.xlane.f32.xlu0 %v2120_v55 }
 0x9e4   : > { %v5981_v56 = vpop.f32.mrb[22].mxu1 }
 0x9e5   : > { %v4914_v57 = vpack.i.bf16 %v5981_v56, %v5978_v50  ;;  %v4670_v58 = vpop.f32.mrb[23].mxu1 }
 0x9e8   : > { %v2114_v59 = vpop.f32.mrb[24].mxu1 }
 0x9e9   : > { %v2119_v60 = vmul.f32 0.25, %v2114_v59  ;;  %v4680_v0 = vpop.f32.mrb[25].mxu1 }
 0x9eb   : > { %v2123_v4 = vsel %vm1127_vm2, %v2119_v60, -inf }
 0x9ec   : > { %2124 = vmax.xlane.f32.xlu1 %v2123_v4 }
 0x9fd   : > { %2218 = vrot.lane.b32.xlu1 %v5850_v2, %s5367_s5 }
 0xa01   : > { %2296 = vrot.lane.b32.xlu1 %v5846_v63, %s5368_s6 }
 0xa05   : > { %2374 = vrot.lane.b32.xlu1 %v5854_v3, %s5368_s6 }
 0xa09   : > { %2372 = vrot.lane.b32.xlu1 %v5848_v1, %s5368_s6 }
 0xa6c   : > { %v2122_v5 = vpop.xlane.xlu0 %2121 }
 0xa6d   : > { %v2126_v6 = vsub.f32 %v2118_v53, %v2122_v5 }
 0xa6f   : > { %v2128_v7 = vmul.f32 1.442695, %v2126_v6 }
 0xa71   : > { %5044 = vpow2.f32 %v2128_v7 }
 0xa79   : > { %v2125_v8 = vpop.xlane.xlu1 %2124 }
 0xa7a   : > { %v2127_v14 = vsub.f32 %v2119_v60, %v2125_v8 }
 0xa7b   : > { %v5045_v10 = vpop.eup %5044 }
 0xa7c   : > { %v2132_v11 = vsel %vm1127_vm2, %v5045_v10, 0.0  ;;  %v2130_v15 = vmul.f32 1.442695, %v2127_v14 }
 0xa7d   : > { %2133 = vadd.xlane.f32.xlu0 %v2132_v11  ;;  %v2219_v13 = vpop.permute.xlu1 %2218 }
 0xa7e   : > { %4687 = vmatpush3.msra.mxu1 %v2219_v13  ;;  %5046 = vpow2.f32 %v2130_v15 }
 0xa7f   : > { %4696 = vmatprep.subr.mxu1 %v5362_v9 }
 0xa81   : > { %v2297_v24 = vpop.permute.xlu1 %2296 }
 0xa85   : > { %v2375_v29 = vpop.permute.xlu1 %2374 }
 0xa88   : > { %v5047_v16 = vpop.eup %5046 }
 0xa89   : > { %v2135_v17 = vsel %vm1127_vm2, %v5047_v16, 0.0  ;;  %v2373_v31 = vpop.permute.xlu1 %2372 }
 0xa93   : > { %2142 = vrot.lane.b32.xlu0 %v5844_v62, %s5367_s5 }
 0xab2   : > { %2136 = vadd.xlane.f32.xlu0 %v2135_v17 }
 0xac8   : > { %2294 = vrot.lane.b32.xlu0 %v5842_v61, %s5368_s6 }
 0xb0a   : > { %v2134_v20 = vpop.xlane.xlu0 %2133 }
 0xb0b   : > { %5048 = vrcp.f32 %v2134_v20 }
 0xb0e   : > { %v2143_v21 = vpop.permute.xlu0 %2142 }
 0xb0f   : > { %4682 = vmatpush3.msra.mxu0 %v2143_v21 }
 0xb10   : > { %4691 = vmatprep.subr.mxu0 %v5362_v9 }
 0xb15   : > { %v5049_v22 = vpop.eup %5048 }
 0xb16   : > { %v2140_v23 = vmul.f32 %v5049_v22, %v5045_v10 }
 0xb18   : > { %4684 = vmatmul.mubr.msk.f32.vlgmr.msra.gmra.mrb[10].mxu0 %vm1127_vm2, %v2140_v23 }
 0xb19   : > { %4692 = vmatpush3.xpose.msk.msra.mxu0 %vm972_vm1, %v2297_v24  ;;  %4693 = vmatprep.mubr.msk.f32.mxu0 %vm5364_vm0, %v5362_v9 }
 0xb1a   : > { %4701 = vmatprep.subr.mxu0 %v5362_v9 }
 0xb3f   : > { %v2137_v25 = vpop.xlane.xlu0 %2136 }
 0xb40   : > { %5050 = vrcp.f32 %v2137_v25 }
 0xb43   : > { %v2295_v27 = vpop.permute.xlu0 %2294 }
 0xb44   : > { %4694 = vmatmul.mubr.msk.f32.vlgmr.msra.gmra.mrb[12].mxu0 %vm972_vm1, %v2295_v27 }
 0xb45   : > { %4703 = vmatprep.mubr.msk.f32.mxu0 %vm5364_vm0, %v5362_v9 }
 0xb4a   : > { %v5051_v28 = vpop.eup %5050 }
 0xb4b   : > { %v2141_v30 = vmul.f32 %v5051_v28, %v5047_v16 }
 0xb4d   : > { %4689 = vmatmul.mubr.msk.f32.vlgmr.msra.gmra.mrb[26].mxu1 %vm1127_vm2, %v2141_v30 }
 0xb4e   : > { %4697 = vmatpush3.xpose.msk.msra.mxu1 %vm972_vm1, %v2375_v29  ;;  %4698 = vmatprep.mubr.msk.f32.mxu1 %vm5364_vm0, %v5362_v9 }
 0xb4f   : > { %4706 = vmatprep.subr.mxu1 %v5362_v9 }
 0xb51   : > { %4699 = vmatmul.mubr.msk.f32.vlgmr.msra.gmra.mrb[28].mxu1 %vm972_vm1, %v2373_v31 }
 0xb52   : > { %4708 = vmatprep.mubr.msk.f32.mxu1 %vm5364_vm0, %v5362_v9 }
 0xbeb   : > { %v6018_v32 = vpop.f32.mrb[10].mxu0 }
 0xbec   : > { %v4685_v33 = vpop.f32.mrb[11].mxu0 }
 0xc17   : > { %v2368_v34 = vpop.f32.mrb[12].mxu0 }
 0xc18   : > { %v2450_v36 = vmul.f32 0.25, %v2368_v34  ;;  %v4695_v38 = vpop.f32.mrb[13].mxu0 }
 0xc1a   : > { %v2452_v39 = vsel %vm1127_vm2, %v2450_v36, -inf }
 0xc1b   : > { %2453 = vmax.xlane.f32.xlu0 %v2452_v39 }
 0xc20   : > { %v6021_v40 = vpop.f32.mrb[26].mxu1 }
 0xc21   : > { %v4919_v41 = vpack.i.bf16 %v6021_v40, %v6018_v32  ;;  %v4690_v42 = vpop.f32.mrb[27].mxu1 }
 0xc24   : > { %v2446_v43 = vpop.f32.mrb[28].mxu1 }
 0xc25   : > { %v2451_v44 = vmul.f32 0.25, %v2446_v43  ;;  %v4700_v45 = vpop.f32.mrb[29].mxu1 }
 0xc27   : > { %v2455_v46 = vsel %vm1127_vm2, %v2451_v44, -inf }
 0xc28   : > { %2456 = vmax.xlane.f32.xlu1 %v2455_v46 }
 0xc39   : > { %2550 = vrot.lane.b32.xlu1 %v5850_v2, %s5368_s6 }
 0xc3d   : > { %2628 = vrot.lane.b32.xlu1 %v5846_v63, %s5369_s11 }
 0xc41   : > { %2706 = vrot.lane.b32.xlu1 %v5854_v3, %s5369_s11 }
 0xc45   : > { %2704 = vrot.lane.b32.xlu1 %v5848_v1, %s5369_s11 }
 0xca8   : > { %v2454_v47 = vpop.xlane.xlu0 %2453 }
 0xca9   : > { %v2458_v48 = vsub.f32 %v2450_v36, %v2454_v47 }
 0xcab   : > { %v2460_v49 = vmul.f32 1.442695, %v2458_v48 }
 0xcad   : > { %5052 = vpow2.f32 %v2460_v49 }
 0xcb5   : > { %v2457_v51 = vpop.xlane.xlu1 %2456 }
 0xcb6   : > { %v2459_v55 = vsub.f32 %v2451_v44, %v2457_v51 }
 0xcb7   : > { %v5053_v52 = vpop.eup %5052 }
 0xcb8   : > { %v2464_v53 = vsel %vm1127_vm2, %v5053_v52, 0.0  ;;  %v2462_v58 = vmul.f32 1.442695, %v2459_v55 }
 0xcb9   : > { %2465 = vadd.xlane.f32.xlu0 %v2464_v53  ;;  %v2551_v54 = vpop.permute.xlu1 %2550 }
 0xcba   : > { %4707 = vmatpush3.msra.mxu1 %v2551_v54  ;;  %5054 = vpow2.f32 %v2462_v58 }
 0xcbb   : > { %4716 = vmatprep.subr.mxu1 %v5362_v9 }
 0xcbd   : > { %v2629_v7 = vpop.permute.xlu1 %2628 }
 0xcc1   : > { %v2707_v13 = vpop.permute.xlu1 %2706 }
 0xcc4   : > { %v5055_v59 = vpop.eup %5054 }
 0xcc5   : > { %v2467_v60 = vsel %vm1127_vm2, %v5055_v59, 0.0  ;;  %v2705_v15 = vpop.permute.xlu1 %2704 }
 0xccf   : > { %2474 = vrot.lane.b32.xlu0 %v5844_v62, %s5368_s6 }
 0xcee   : > { %2468 = vadd.xlane.f32.xlu0 %v2467_v60 }
 0xd04   : > { %2626 = vrot.lane.b32.xlu0 %v5842_v61, %s5369_s11 }
 0xd46   : > { %v2466_v0 = vpop.xlane.xlu0 %2465 }
 0xd47   : > { %5056 = vrcp.f32 %v2466_v0 }
 0xd4a   : > { %v2475_v4 = vpop.permute.xlu0 %2474 }
 0xd4b   : > { %4702 = vmatpush3.msra.mxu0 %v2475_v4 }
 0xd4c   : > { %4711 = vmatprep.subr.mxu0 %v5362_v9 }
 0xd51   : > { %v5057_v5 = vpop.eup %5056 }
 0xd52   : > { %v2472_v6 = vmul.f32 %v5057_v5, %v5053_v52 }
 0xd54   : > { %4704 = vmatmul.mubr.msk.f32.vlgmr.msra.gmra.mrb[14].mxu0 %vm1127_vm2, %v2472_v6 }
 0xd55   : > { %4712 = vmatpush3.xpose.msk.msra.mxu0 %vm972_vm1, %v2629_v7  ;;  %4713 = vmatprep.mubr.msk.f32.mxu0 %vm5364_vm0, %v5362_v9 }
 0xd56   : > { %4721 = vmatprep.subr.mxu0 %v5362_v9 }
 0xd7b   : > { %v2469_v8 = vpop.xlane.xlu0 %2468 }
 0xd7c   : > { %5058 = vrcp.f32 %v2469_v8 }
 0xd7f   : > { %v2627_v10 = vpop.permute.xlu0 %2626 }
 0xd80   : > { %4714 = vmatmul.mubr.msk.f32.vlgmr.msra.gmra.mrb[16].mxu0 %vm972_vm1, %v2627_v10 }
 0xd81   : > { %4723 = vmatprep.mubr.msk.f32.mxu0 %vm5364_vm0, %v5362_v9 }
 0xd86   : > { %v5059_v11 = vpop.eup %5058 }
 0xd87   : > { %v2473_v14 = vmul.f32 %v5059_v11, %v5055_v59 }
 0xd89   : > { %4709 = vmatmul.mubr.msk.f32.vlgmr.msra.gmra.mrb[30].mxu1 %vm1127_vm2, %v2473_v14 }
 0xd8a   : > { %4717 = vmatpush3.xpose.msk.msra.mxu1 %vm972_vm1, %v2707_v13  ;;  %4718 = vmatprep.mubr.msk.f32.mxu1 %vm5364_vm0, %v5362_v9 }
 0xd8b   : > { %4726 = vmatprep.subr.mxu1 %v5362_v9 }
 0xd8d   : > { %4719 = vmatmul.mubr.msk.f32.vlgmr.msra.gmra.mrb[32].mxu1 %vm972_vm1, %v2705_v15 }
 0xd8e   : > { %4728 = vmatprep.mubr.msk.f32.mxu1 %vm5364_vm0, %v5362_v9 }
 0xe27   : > { %v6058_v16 = vpop.f32.mrb[14].mxu0 }
 0xe28   : > { %v4705_v17 = vpop.f32.mrb[15].mxu0 }
 0xe53   : > { %v2700_v20 = vpop.f32.mrb[16].mxu0 }
 0xe54   : > { %v2782_v21 = vmul.f32 0.25, %v2700_v20  ;;  %v4715_v22 = vpop.f32.mrb[17].mxu0 }
 0xe56   : > { %v2784_v23 = vsel %vm1127_vm2, %v2782_v21, -inf }
 0xe57   : > { %2785 = vmax.xlane.f32.xlu0 %v2784_v23 }
 0xe5c   : > { %v6061_v24 = vpop.f32.mrb[30].mxu1 }
 0xe5d   : > { %v4924_v25 = vpack.i.bf16 %v6061_v24, %v6058_v16  ;;  %v4710_v27 = vpop.f32.mrb[31].mxu1 }
 0xe60   : > { %v2778_v28 = vpop.f32.mrb[32].mxu1 }
 0xe61   : > { %v2783_v29 = vmul.f32 0.25, %v2778_v28  ;;  %v4720_v30 = vpop.f32.mrb[33].mxu1 }
 0xe63   : > { %v2787_v31 = vsel %vm1127_vm2, %v2783_v29, -inf }
 0xe64   : > { %2788 = vmax.xlane.f32.xlu1 %v2787_v31 }
 0xe75   : > { %2882 = vrot.lane.b32.xlu1 %v5850_v2, %s5369_s11 }
 0xe79   : > { %2960 = vrot.lane.b32.xlu1 %v5846_v63, %s5370_s12 }
 0xe7d   : > { %3038 = vrot.lane.b32.xlu1 %v5854_v3, %s5370_s12 }
 0xe81   : > { %3036 = vrot.lane.b32.xlu1 %v5848_v1, %s5370_s12 }
 0xee4   : > { %v2786_v33 = vpop.xlane.xlu0 %2785 }
 0xee5   : > { %v2790_v34 = vsub.f32 %v2782_v21, %v2786_v33 }
 0xee7   : > { %v2792_v36 = vmul.f32 1.442695, %v2790_v34 }
 0xee9   : > { %5060 = vpow2.f32 %v2792_v36 }
 0xef1   : > { %v2789_v38 = vpop.xlane.xlu1 %2788 }
 0xef2   : > { %v2791_v44 = vsub.f32 %v2783_v29, %v2789_v38 }
 0xef3   : > { %v5061_v39 = vpop.eup %5060 }
 0xef4   : > { %v2796_v42 = vsel %vm1127_vm2, %v5061_v39, 0.0  ;;  %v2794_v45 = vmul.f32 1.442695, %v2791_v44 }
 0xef5   : > { %2797 = vadd.xlane.f32.xlu0 %v2796_v42  ;;  %v2883_v43 = vpop.permute.xlu1 %2882 }
 0xef6   : > { %4727 = vmatpush3.msra.mxu1 %v2883_v43  ;;  %5062 = vpow2.f32 %v2794_v45 }
 0xef7   : > { %4736 = vmatprep.subr.mxu1 %v5362_v9 }
 0xef9   : > { %v2961_v53 = vpop.permute.xlu1 %2960 }
 0xefd   : > { %v3039_v59 = vpop.permute.xlu1 %3038 }
 0xf00   : > { %v5063_v46 = vpop.eup %5062 }
 0xf01   : > { %v2799_v47 = vsel %vm1127_vm2, %v5063_v46, 0.0  ;;  %v3037_v0 = vpop.permute.xlu1 %3036 }
 0xf0b   : > { %2806 = vrot.lane.b32.xlu0 %v5844_v62, %s5369_s11 }
 0xf2a   : > { %2800 = vadd.xlane.f32.xlu0 %v2799_v47 }
 0xf40   : > { %2958 = vrot.lane.b32.xlu0 %v5842_v61, %s5370_s12 }
 0xf82   : > { %v2798_v48 = vpop.xlane.xlu0 %2797 }
 0xf83   : > { %5064 = vrcp.f32 %v2798_v48 }
 0xf86   : > { %v2807_v49 = vpop.permute.xlu0 %2806 }
 0xf87   : > { %4722 = vmatpush3.msra.mxu0 %v2807_v49 }
 0xf88   : > { %4731 = vmatprep.subr.mxu0 %v5362_v9 }
 0xf8d   : > { %v5065_v51 = vpop.eup %5064 }
 0xf8e   : > { %v2804_v52 = vmul.f32 %v5065_v51, %v5061_v39 }
 0xf90   : > { %4724 = vmatmul.mubr.msk.f32.vlgmr.msra.gmra.mrb[18].mxu0 %vm1127_vm2, %v2804_v52 }
 0xf91   : > { %4732 = vmatpush3.xpose.msk.msra.mxu0 %vm972_vm1, %v2961_v53  ;;  %4733 = vmatprep.mubr.msk.f32.mxu0 %vm5364_vm0, %v5362_v9 }
 0xf92   : > { %4741 = vmatprep.subr.mxu0 %v5362_v9 }
 0xfb7   : > { %v2801_v54 = vpop.xlane.xlu0 %2800 }
 0xfb8   : > { %5066 = vrcp.f32 %v2801_v54 }
 0xfbb   : > { %v2959_v55 = vpop.permute.xlu0 %2958 }
 0xfbc   : > { %4734 = vmatmul.mubr.msk.f32.vlgmr.msra.gmra.mrb[20].mxu0 %vm972_vm1, %v2959_v55 }
 0xfbd   : > { %4743 = vmatprep.mubr.msk.f32.mxu0 %vm5364_vm0, %v5362_v9 }
 0xfc2   : > { %v5067_v58 = vpop.eup %5066 }
 0xfc3   : > { %v2805_v60 = vmul.f32 %v5067_v58, %v5063_v46 }
 0xfc5   : > { %4729 = vmatmul.mubr.msk.f32.vlgmr.msra.gmra.mrb[34].mxu1 %vm1127_vm2, %v2805_v60 }
 0xfc6   : > { %4737 = vmatpush3.xpose.msk.msra.mxu1 %vm972_vm1, %v3039_v59  ;;  %4738 = vmatprep.mubr.msk.f32.mxu1 %vm5364_vm0, %v5362_v9 }
 0xfc7   : > { %4746 = vmatprep.subr.mxu1 %v5362_v9 }
 0xfc9   : > { %4739 = vmatmul.mubr.msk.f32.vlgmr.msra.gmra.mrb[36].mxu1 %vm972_vm1, %v3037_v0 }
 0xfca   : > { %4748 = vmatprep.mubr.msk.f32.mxu1 %vm5364_vm0, %v5362_v9 }
0x1063   : > { %v6098_v4 = vpop.f32.mrb[18].mxu0 }
0x1064   : > { %v4725_v5 = vpop.f32.mrb[19].mxu0 }
0x108f   : > { %v3032_v6 = vpop.f32.mrb[20].mxu0 }
0x1090   : > { %v3114_v7 = vmul.f32 0.25, %v3032_v6  ;;  %v4735_v8 = vpop.f32.mrb[21].mxu0 }
0x1092   : > { %v3116_v10 = vsel %vm1127_vm2, %v3114_v7, -inf }
0x1093   : > { %3117 = vmax.xlane.f32.xlu0 %v3116_v10 }
0x1098   : > { %v6101_v11 = vpop.f32.mrb[34].mxu1 }
0x1099   : > { %v4929_v13 = vpack.i.bf16 %v6101_v11, %v6098_v4  ;;  %v4730_v14 = vpop.f32.mrb[35].mxu1  ;;  %v4977_v4 = vld [vmem:[%s5734_s20 + $0x8] sm:$0xff]   ;;  %v4978_v11 = vld [vmem:[%s5734_s20 + $0x10] sm:$0xff]  }
0x109c   : > { %v3110_v15 = vpop.f32.mrb[36].mxu1 }
0x109d   : > { %v3115_v17 = vmul.f32 0.25, %v3110_v15  ;;  %v4740_v20 = vpop.f32.mrb[37].mxu1 }
0x109e   : > { %v4982_v20 = vld [vmem:[%s5734_s20 + $0x30] sm:$0xff]  }
0x109f   : > { %v3119_v21 = vsel %vm1127_vm2, %v3115_v17, -inf }
0x10a0   : > { %3120 = vmax.xlane.f32.xlu1 %v3119_v21  ;;  %v4983_v21 = vld [vmem:[%s5734_s20 + $0x38] sm:$0xff]  }
0x10b1   : > { %3214 = vrot.lane.b32.xlu1 %v5850_v2, %s5370_s12 }
0x10b5   : > { %3292 = vrot.lane.b32.xlu1 %v5846_v63, %s5371_s29 }
0x10b9   : > { %3370 = vrot.lane.b32.xlu1 %v5854_v3, %s5371_s29 }
0x10bd   : > { %3368 = vrot.lane.b32.xlu1 %v5848_v1, %s5371_s29 }
0x1120   : > { %v3118_v22 = vpop.xlane.xlu0 %3117 }
0x1121   : > { %v3122_v23 = vsub.f32 %v3114_v7, %v3118_v22 }
0x1123   : > { %v3124_v27 = vmul.f32 1.442695, %v3122_v23 }
0x1125   : > { %5068 = vpow2.f32 %v3124_v27 }
0x112d   : > { %v3121_v28 = vpop.xlane.xlu1 %3120 }
0x112e   : > { %v3123_v63 = vsub.f32 %v3115_v17, %v3121_v28  ;;  %v4980_v17 = vld [vmem:[%s5734_s20 + $0x20] sm:$0xff]  }
0x112f   : > { %v5069_v29 = vpop.eup %5068 }
0x1130   : > { %v3128_v30 = vsel %vm1127_vm2, %v5069_v29, 0.0  ;;  %v3126_v3 = vmul.f32 1.442695, %v3123_v63 }
0x1131   : > { %3129 = vadd.xlane.f32.xlu0 %v3128_v30  ;;  %v3215_v31 = vpop.permute.xlu1 %3214 }
0x1132   : > { %4747 = vmatpush3.msra.mxu1 %v3215_v31  ;;  %5070 = vpow2.f32 %v3126_v3 }
0x1133   : > { %4756 = vmatprep.subr.mxu1 %v5362_v9 }
0x1135   : > { %v3293_v42 = vpop.permute.xlu1 %3292 }
0x1139   : > { %v3371_v45 = vpop.permute.xlu1 %3370 }
0x113c   : > { %v5071_v1 = vpop.eup %5070 }
0x113d   : > { %v3131_v33 = vsel %vm1127_vm2, %v5071_v1, 0.0  ;;  %v3369_v47 = vpop.permute.xlu1 %3368 }
0x1147   : > { %3138 = vrot.lane.b32.xlu0 %v5844_v62, %s5370_s12 }
0x1166   : > { %3132 = vadd.xlane.f32.xlu0 %v3131_v33 }
0x117c   : > { %3290 = vrot.lane.b32.xlu0 %v5842_v61, %s5371_s29 }
0x11be   : > { %v3130_v34 = vpop.xlane.xlu0 %3129 }
0x11bf   : > { %5072 = vrcp.f32 %v3130_v34 }
0x11c2   : > { %v3139_v36 = vpop.permute.xlu0 %3138 }
0x11c3   : > { %4742 = vmatpush3.msra.mxu0 %v3139_v36 }
0x11c4   : > { %4751 = vmatprep.subr.mxu0 %v5362_v9 }
0x11c9   : > { %v5073_v38 = vpop.eup %5072 }
0x11ca   : > { %v3136_v39 = vmul.f32 %v5073_v38, %v5069_v29 }
0x11cc   : > { %4744 = vmatmul.mubr.msk.f32.vlgmr.msra.gmra.mrb[22].mxu0 %vm1127_vm2, %v3136_v39 }
0x11cd   : > { %4752 = vmatpush3.xpose.msk.msra.mxu0 %vm972_vm1, %v3293_v42  ;;  %4753 = vmatprep.mubr.msk.f32.mxu0 %vm5364_vm0, %v5362_v9 }
0x11ce   : > { %4761 = vmatprep.subr.mxu0 %v5362_v9 }
0x11f3   : > { %v3133_v43 = vpop.xlane.xlu0 %3132 }
0x11f4   : > { %5074 = vrcp.f32 %v3133_v43 }
0x11f7   : > { %v3291_v61 = vpop.permute.xlu0 %3290 }
0x11f8   : > { %4754 = vmatmul.mubr.msk.f32.vlgmr.msra.gmra.mrb[24].mxu0 %vm972_vm1, %v3291_v61 }
0x11f9   : > { %4763 = vmatprep.mubr.msk.f32.mxu0 %vm5364_vm0, %v5362_v9 }
0x11fe   : > { %v5075_v44 = vpop.eup %5074 }
0x11ff   : > { %v3137_v46 = vmul.f32 %v5075_v44, %v5071_v1 }
0x1201   : > { %4749 = vmatmul.mubr.msk.f32.vlgmr.msra.gmra.mrb[38].mxu1 %vm1127_vm2, %v3137_v46 }
0x1202   : > { %4757 = vmatpush3.xpose.msk.msra.mxu1 %vm972_vm1, %v3371_v45  ;;  %4758 = vmatprep.mubr.msk.f32.mxu1 %vm5364_vm0, %v5362_v9 }
0x1203   : > { %4766 = vmatprep.subr.mxu1 %v5362_v9 }
0x1205   : > { %4759 = vmatmul.mubr.msk.f32.vlgmr.msra.gmra.mrb[40].mxu1 %vm972_vm1, %v3369_v47 }
0x1206   : > { %4768 = vmatprep.mubr.msk.f32.mxu1 %vm5364_vm0, %v5362_v9 }
0x129f   : > { %v3210_v48 = vpop.f32.mrb[22].mxu0 }
0x12a0   : > { %v4745_v49 = vpop.f32.mrb[23].mxu0 }
0x12cb   : > { %v3364_v51 = vpop.f32.mrb[24].mxu0 }
0x12cc   : > { %v3446_v52 = vmul.f32 0.25, %v3364_v51  ;;  %v4755_v53 = vpop.f32.mrb[25].mxu0 }
0x12ce   : > { %v3448_v54 = vsel %vm1127_vm2, %v3446_v52, -inf }
0x12cf   : > { %3449 = vmax.xlane.f32.xlu0 %v3448_v54 }
0x12d4   : > { %v3286_v55 = vpop.f32.mrb[38].mxu1 }
0x12d5   : > { %v4934_v58 = vpack.i.bf16 %v3286_v55, %v3210_v48  ;;  %v4750_v59 = vpop.f32.mrb[39].mxu1 }
0x12d8   : > { %v3442_v60 = vpop.f32.mrb[40].mxu1 }
0x12d9   : > { %v3447_v0 = vmul.f32 0.25, %v3442_v60  ;;  %v4760_v5 = vpop.f32.mrb[41].mxu1 }
0x12db   : > { %v3451_v6 = vsel %vm1127_vm2, %v3447_v0, -inf }
0x12dc   : > { %3452 = vmax.xlane.f32.xlu1 %v3451_v6 }
0x12ed   : > { %3546 = vrot.lane.b32.xlu1 %v5850_v2, %s5371_s29 }
0x12f1   : > { %4910 = vrot.lane.b32.xlu1 %v4909_v19, %s5371_s29 }
0x12f5   : > { %4915 = vrot.lane.b32.xlu1 %v4914_v57, %s5370_s12 }
0x12f9   : > { %4925 = vrot.lane.b32.xlu1 %v4924_v25, %s5368_s6 }
0x12fd   : > { %4935 = vrot.lane.b32.xlu1 %v4934_v58, %s5366_s28 }
0x135c   : > { %v3450_v7 = vpop.xlane.xlu0 %3449 }
0x135d   : > { %v3454_v8 = vsub.f32 %v3446_v52, %v3450_v7 }
0x135f   : > { %v3456_v2 = vmul.f32 1.442695, %v3454_v8 }
0x1361   : > { %5076 = vpow2.f32 %v3456_v2 }
0x1369   : > { %v3453_v10 = vpop.xlane.xlu1 %3452 }
0x136a   : > { %v3455_v14 = vsub.f32 %v3447_v0, %v3453_v10 }
0x136b   : > { %v5077_v12 = vpop.eup %5076 }
0x136c   : > { %v3458_v18 = vmul.f32 1.442695, %v3455_v14  ;;  %v3460_v19 = vsel %vm1127_vm2, %v5077_v12, 0.0  ;;  %v4457_v14 = vld [vmem:[%s656_s2] ss:$0 sm:$0xff] }
0x136d   : > { %3461 = vadd.xlane.f32.xlu0 %v3460_v19  ;;  %v3547_v50 = vpop.permute.xlu1 %3546 }
0x136e   : > { %5078 = vpow2.f32 %v3458_v18  ;;  %4767 = vmatpush3.msra.mxu1 %v3547_v50 }
0x1371   : > { %v4911_v30 = vpop.permute.xlu1 %4910 }
0x1372   : > { %v4913_v3 = vunpack.i.h.bf16 %v4911_v30  ;;  %v4912_v1 = vunpack.i.l.bf16 %v4911_v30  ;;  %v5007_v30 = vld [vmem:[%s5741_s17 + $0x74] ss:$8 sps:$4 sm:$0xff]  }
0x1374   : > { %v3679_v43 = vsel %vm972_vm1, %v5902_v37, %v4913_v3  ;;  %v3678_v61 = vsel %vm972_vm1, %v5900_v35, %v4912_v1 }
0x1375   : > { %v4916_v31 = vpop.permute.xlu1 %4915 }
0x1376   : > { %v4918_v33 = vunpack.i.h.bf16 %v4916_v31  ;;  %v4917_v34 = vunpack.i.l.bf16 %v4916_v31  ;;  %v5005_v31 = vld [vmem:[%s5741_s17 + $0x70] ss:$8 sps:$4 sm:$0xff]  }
0x1378   : > { %v5079_v56 = vpop.eup %5078  ;;  %v3681_v44 = vsel %vm3680_vm3, %v3678_v61, %v4917_v34  ;;  %v3682_v45 = vsel %vm3680_vm3, %v3679_v43, %v4918_v33 }
0x1379   : > { %v3463_v57 = vsel %vm1127_vm2, %v5079_v56, 0.0  ;;  %v4926_v36 = vpop.permute.xlu1 %4925 }
0x137a   : > { %3464 = vadd.xlane.f32.xlu0 %v3463_v57  ;;  %v4928_v51 = vunpack.i.h.bf16 %v4926_v36  ;;  %v4927_v52 = vunpack.i.l.bf16 %v4926_v36 }
0x137d   : > { %v4936_v53 = vpop.permute.xlu1 %4935 }
0x137e   : > { %v4938_v37 = vunpack.i.h.bf16 %v4936_v53  ;;  %v4937_v60 = vunpack.i.l.bf16 %v4936_v53  ;;  %v4466_v53 = vld [vmem:[%s659_s19] ss:$0 sm:$0xff] }
0x1390   : > { %3470 = vrot.lane.b32.xlu0 %v5844_v62, %s5371_s29 }
0x1394   : > { %4920 = vrot.lane.b32.xlu0 %v4919_v41, %s5369_s11  ;;  %v4976_v41 = vld [vmem:[%s5734_s20] sm:$0xff]  }
0x1398   : > { %4930 = vrot.lane.b32.xlu0 %v4929_v13, %s5367_s5  ;;  %v4979_v13 = vld [vmem:[%s5734_s20 + $0x18] sm:$0xff]  }
0x13fa   : > { %v3462_v16 = vpop.xlane.xlu0 %3461 }
0x13fb   : > { %5080 = vrcp.f32 %v3462_v16 }
0x1405   : > { %v5081_v25 = vpop.eup %5080 }
0x1406   : > { %v3468_v15 = vmul.f32 %v5081_v25, %v5077_v12  ;;  %v5093_v25 = vld [vmem:[#allocation2 + $0x8] sm:$0xff] }
0x1407   : > { %v3465_v24 = vpop.xlane.xlu0 %3464 }
0x1408   : > { %5082 = vrcp.f32 %v3465_v24 }
0x140b   : > { %v3471_v62 = vpop.permute.xlu0 %3470 }
0x140c   : > { %4762 = vmatpush3.msra.mxu0 %v3471_v62 }
0x140d   : > { %4764 = vmatmul.mubr.msk.f32.vlgmr.msra.gmra.mrb[26].mxu0 %vm1127_vm2, %v3468_v15  ;;  %4771 = vmatprep.subr.bf16.mxu0 %v5362_v9 }
0x140e   : > { %4787 = vmatprep.mubr.msk.bf16.mxu0 %vm5364_vm0, %v5362_v9  ;;  %4772 = vmatpush3.bf16.msra.mxu0 %v4976_v41  ;;  %v4986_v41 = vld [vmem:[%s5741_s17 + $0x4] ss:$8 sps:$4 sm:$0xff]  }
0x140f   : > { %4773 = vmatprep.subr.bf16.mxu0 %v5362_v9  ;;  %v4921_v63 = vpop.permute.xlu0 %4920  ;;  %3968 = vmatprep.subr.bf16.mxu1 %v4986_v41 }
0x1410   : > { %v4923_v38 = vunpack.i.h.bf16 %v4921_v63  ;;  %v4922_v39 = vunpack.i.l.bf16 %v4921_v63 }
0x1412   : > { %v5083_v32 = vpop.eup %5082  ;;  %4774 = vmatpush3.bf16.msra.mxu0 %v4977_v4  ;;  %v3684_v46 = vsel %vm3683_vm4, %v3681_v44, %v4922_v39  ;;  %v3685_v47 = vsel %vm3683_vm4, %v3682_v45, %v4923_v38  ;;  %v4989_v4 = vld [vmem:[%s5741_s17 + $0x14] ss:$8 sps:$4 sm:$0xff]  }
0x1413   : > { %v3469_v40 = vmul.f32 %v5083_v32, %v5079_v56  ;;  %4775 = vmatprep.subr.bf16.mxu0 %v5362_v9  ;;  %v4931_v42 = vpop.permute.xlu0 %4930  ;;  %v3687_v54 = vsel %vm3686_vm5, %v3684_v46, %v4927_v52  ;;  %v3688_v55 = vsel %vm3686_vm5, %v3685_v47, %v4928_v51  ;;  %v5092_v56 = vld [vmem:[#allocation2] sm:$0xff] }
0x1414   : > { %v4933_v48 = vunpack.i.h.bf16 %v4931_v42  ;;  %v4932_v49 = vunpack.i.l.bf16 %v4931_v42 }
0x1415   : > { %4769 = vmatmul.mubr.msk.f32.vlgmr.msra.gmra.mrb[42].mxu1 %vm1127_vm2, %v3469_v40  ;;  %v4984_v40 = vld [vmem:[%s5741_s17] ss:$8 sps:$4 sm:$0xff]  }
0x1416   : > { %4000 = vmatprep.mubr.bf16.mxu1 %v5363_v26  ;;  %4776 = vmatpush3.bf16.msra.mxu0 %v4978_v11  ;;  %v4981_v26 = vld [vmem:[%s5734_s20 + $0x28] sm:$0xff]   ;;  %v3690_v58 = vsel %vm3689_vm6, %v3687_v54, %v4932_v49  ;;  %v3691_v59 = vsel %vm3689_vm6, %v3688_v55, %v4933_v48  ;;  %v4987_v11 = vld [vmem:[%s5741_s17 + $0x10] ss:$8 sps:$4 sm:$0xff]  }
0x1417   : > { %4777 = vmatprep.subr.bf16.mxu0 %v5362_v9  ;;  %v3693_v6 = vsel %vm3692_vm7, %v3690_v58, %v4937_v60  ;;  %v3694_v7 = vsel %vm3692_vm7, %v3691_v59, %v4938_v37  ;;  %3969 = vmatpush1.bf16.msra.mxu1 %v4984_v40  ;;  %v4467_v37 = vld [vmem:[%s662_s26] ss:$0 sm:$0xff]  ;;  %s5372_s26 = smov [#allocation14]  }
0x1418   : > { %3970 = vmatprep.subr.bf16.mxu1 %v4989_v4  ;;  %s4156_s7 = sshll.u32 %s5372_s26, 4  ;;  %s4157_s7 = int_to_ptr.vmem [resolvable:$true] %s4156_s7 }
0x1419   : > { %p5279_p12 = scmp.lt.s32.totalorder %s4157_s7, %s4157_s7 }
0x141a   : > { %4778 = vmatpush3.bf16.msra.mxu0 %v4979_v13  ;;  %v4992_v13 = vld [vmem:[%s5741_s17 + $0x24] ss:$8 sps:$4 sm:$0xff]  }
0x141b   : > { %4779 = vmatprep.subr.bf16.mxu0 %v5362_v9  ;;  %3971 = vmatpush1.bf16.msra.mxu1 %v4987_v11 }
0x141c   : > { %3972 = vmatprep.subr.bf16.mxu1 %v4992_v13 }
0x141e   : > { %4780 = vmatpush3.bf16.msra.mxu0 %v4980_v17  ;;  %v4990_v17 = vld [vmem:[%s5741_s17 + $0x20] ss:$8 sps:$4 sm:$0xff]  }
0x141f   : > { %4781 = vmatprep.subr.bf16.mxu0 %v5362_v9  ;;  %3973 = vmatpush1.bf16.msra.mxu1 %v4990_v17 }
0x1422   : > { %4782 = vmatpush3.bf16.msra.mxu0 %v4981_v26  ;;  %v4995_v26 = vld [vmem:[%s5741_s17 + $0x34] ss:$8 sps:$4 sm:$0xff]  }
0x1423   : > { %4783 = vmatprep.subr.bf16.mxu0 %v5362_v9  ;;  %3974 = vmatprep.subr.bf16.mxu1 %v4995_v26 }
0x1426   : > { %4784 = vmatpush3.bf16.msra.mxu0 %v4982_v20  ;;  %v4993_v20 = vld [vmem:[%s5741_s17 + $0x30] ss:$8 sps:$4 sm:$0xff]  }
0x1427   : > { %4785 = vmatprep.subr.bf16.mxu0 %v5362_v9  ;;  %3975 = vmatpush1.bf16.msra.mxu1 %v4993_v20 }
0x142a   : > { %4786 = vmatpush3.bf16.msra.mxu0 %v4983_v21  ;;  %v4998_v21 = vld [vmem:[%s5741_s17 + $0x44] ss:$8 sps:$4 sm:$0xff]  }
0x142b   : > { %4791 = vmatprep.subr.bf16.mxu0 %v5362_v9  ;;  %3976 = vmatprep.subr.bf16.mxu1 %v4998_v21 }
0x14e0   : > { %v3542_v22 = vpop.f32.mrb[26].mxu0 }
0x14e1   : > { %v4765_v23 = vpop.f32.mrb[27].mxu0 }
0x14e2   : > { %v5001_v23 = vld [vmem:[%s5741_s17 + $0x54] ss:$8 sps:$4 sm:$0xff]  }
0x14e8   : > { %v3618_v27 = vpop.f32.mrb[42].mxu1 }
0x14e9   : > { %v4939_v28 = vpack.i.bf16 %v3618_v27, %v3542_v22  ;;  %v4770_v29 = vpop.f32.mrb[43].mxu1  ;;  %v4996_v22 = vld [vmem:[%s5741_s17 + $0x40] ss:$8 sps:$4 sm:$0xff]   ;;  %v4999_v27 = vld [vmem:[%s5741_s17 + $0x50] ss:$8 sps:$4 sm:$0xff]  }
0x14ea   : > { %3977 = vmatpush1.bf16.msra.mxu1 %v4996_v22  ;;  %v5002_v29 = vld [vmem:[%s5741_s17 + $0x60] ss:$8 sps:$4 sm:$0xff]  }
0x14eb   : > { %4940 = vrot.lane.b32.xlu0 %v4939_v28, %s5365_s13  ;;  %3978 = vmatprep.subr.bf16.mxu1 %v5001_v23  ;;  %v5004_v28 = vld [vmem:[%s5741_s17 + $0x64] ss:$8 sps:$4 sm:$0xff]  }
0x14ee   : > { %3979 = vmatpush1.bf16.msra.mxu1 %v4999_v27 }
0x14ef   : > { %3980 = vmatprep.subr.bf16.mxu1 %v5004_v28 }
0x14f2   : > { %3981 = vmatpush1.bf16.msra.mxu1 %v5002_v29 }
0x14f3   : > { %3982 = vmatprep.subr.bf16.mxu1 %v5007_v30 }
0x14f6   : > { %3983 = vmatpush1.bf16.msra.mxu1 %v5005_v31 }
0x155d   : > { %v4941_v35 = vpop.permute.xlu0 %4940 }
0x155e   : > { %v4943_v0 = vunpack.i.h.bf16 %v4941_v35  ;;  %v4942_v5 = vunpack.i.l.bf16 %v4941_v35 }
0x1560   : > { %v3697_v8 = vsel %vm3695_vm8, %v3694_v7, %v4943_v0  ;;  %v3696_v2 = vsel %vm3695_vm8, %v3693_v6, %v4942_v5  ;;  %v5008_v6 = vld [vmem:[%s5744_s23] sm:$0xff]   ;;  %v5009_v7 = vld [vmem:[%s5744_s23 + $0x8] sm:$0xff]  }
0x1561   : > { %v3698_v10 = vpack.c.bf16 %v3697_v8, %v3696_v2  ;;  %v5010_v8 = vld [vmem:[%s5744_s23 + $0x10] sm:$0xff]   ;;  %v5011_v2 = vld [vmem:[%s5744_s23 + $0x18] sm:$0xff]  }
0x1563   : > { %4788 = vmatmul.mubr.bf16.vlgmr.msra.gmra.mrb[28].mxu0 %v3698_v10  ;;  %v5012_v10 = vld [vmem:[%s5744_s23 + $0x20] sm:$0xff]  }
0x1564   : > { %4807 = vmatprep.mubr.msk.bf16.mxu0 %vm5364_vm0, %v5362_v9  ;;  %4792 = vmatpush3.bf16.msra.mxu0 %v5008_v6 }
0x1565   : > { %4793 = vmatprep.subr.bf16.mxu0 %v5362_v9 }
0x1568   : > { %4794 = vmatpush3.bf16.msra.mxu0 %v5009_v7 }
0x1569   : > { %4795 = vmatprep.subr.bf16.mxu0 %v5362_v9 }
0x156c   : > { %4796 = vmatpush3.bf16.msra.mxu0 %v5010_v8 }
0x156d   : > { %4797 = vmatprep.subr.bf16.mxu0 %v5362_v9 }
0x1570   : > { %4798 = vmatpush3.bf16.msra.mxu0 %v5011_v2 }
0x1571   : > { %4799 = vmatprep.subr.bf16.mxu0 %v5362_v9 }
0x1574   : > { %4800 = vmatpush3.bf16.msra.mxu0 %v5012_v10 }
0x1575   : > { %4801 = vmatprep.subr.bf16.mxu0 %v5362_v9 }
0x1636   : > { %v3804_v12 = vpop.f32.mrb[28].mxu0 }
0x1637   : > { %v3805_v18 = vadd.f32 %v4457_v14, %v3804_v12  ;;  %v4789_v19 = vpop.f32.mrb[29].mxu0  ;;  %v5014_v12 = vld [vmem:[%s5744_s23 + $0x30] sm:$0xff]  }
0x1638   : > { %v3807_v50 = vpop.f32.mrb[30].mxu0  ;;  %v3878_v19 = vlaneseq }
0x1639   : > { %v6201_v57 = vadd.f32 %v5092_v56, %v3805_v18  ;;  %v3808_v16 = vadd.f32 %v4457_v14, %v3807_v50  ;;  %v4790_v24 = vpop.f32.mrb[31].mxu0  ;;  %v5013_v14 = vld [vmem:[%s5744_s23 + $0x28] sm:$0xff]   ;;  %v5015_v18 = vld [vmem:[%s5744_s23 + $0x38] sm:$0xff]  }
0x163a   : > { %4802 = vmatpush3.bf16.msra.mxu0 %v5013_v14  ;;  %v3879_v50 = vshrl.u32 %v3878_v19, 7 }
0x163b   : > { %v6203_v15 = vadd.f32 %v5093_v25, %v3808_v16  ;;  %3815 = vadd.xlane.f32.xlu1 %v6201_v57  ;;  %v3821_v62 = vmul.f32 %v6201_v57, %v6201_v57  ;;  %4803 = vmatprep.subr.bf16.mxu0 %v5362_v9  ;;  %v3876_v16 = vld [vmem:[%s5778_s8] sm:$0x3] }
0x163c   : > { %v3884_v56 = vsub.s32 1, %v3879_v50  ;;  %v3880_v28 = vsub.s32 0, %v3879_v50 }
0x163d   : > { %3817 = vadd.xlane.f32.xlu0 %v6203_v15  ;;  %v3822_v32 = vmul.f32 %v6203_v15, %v6203_v15 }
0x163e   : > { %4804 = vmatpush3.bf16.msra.mxu0 %v5014_v12  ;;  %v3885_v24 = vrot.slane %v3876_v16, %v3884_v56  ;;  %v3881_v29 = vrot.slane %v3876_v16, %v3880_v28 }
0x163f   : > { %4805 = vmatprep.subr.bf16.mxu0 %v5362_v9 }
0x1641   : > { %3823 = vadd.xlane.f32.xlu0 %v3821_v62 }
0x1642   : > { %4806 = vmatpush3.bf16.msra.mxu0 %v5015_v18 }
0x1645   : > { %3825 = vadd.xlane.f32.xlu0 %v3822_v32 }
0x16c8   : > { %v3816_v63 = vpop.xlane.xlu1 %3815 }
0x16c9   : > { %v3819_v1 = vmul.f32 0.03125, %v3816_v63 }
0x16ca   : > { %v3818_v3 = vpop.xlane.xlu0 %3817 }
0x16cb   : > { %v3829_v34 = vmul.f32 %v3819_v1, %v3819_v1  ;;  %v3820_v36 = vmul.f32 0.03125, %v3818_v3  ;;  %v3835_v49 = vsub.f32 %v6201_v57, %v3819_v1 }
0x16cd   : > { %v3830_v43 = vmul.f32 %v3820_v36, %v3820_v36  ;;  %v3836_v54 = vsub.f32 %v6203_v15, %v3820_v36 }
0x16ce   : > { %v3824_v33 = vpop.xlane.xlu0 %3823 }
0x16cf   : > { %v3827_v38 = vmul.f32 0.03125, %v3824_v33 }
0x16d1   : > { %v3831_v39 = vsub.f32 %v3827_v38, %v3829_v34 }
0x16d2   : > { %v3826_v42 = vpop.xlane.xlu0 %3825 }
0x16d3   : > { %v3833_v61 = vmax.f32 %v3831_v39, 0.0  ;;  %v3828_v44 = vmul.f32 0.03125, %v3826_v42 }
0x16d5   : > { %v3837_v45 = vadd.f32 1e-05, %v3833_v61  ;;  %v3832_v46 = vsub.f32 %v3828_v44, %v3830_v43  ;;  %v4484_v44 = vld [vmem:[%s669_s16] ss:$0 sm:$0xff]  ;;  %s5272_s16 = scalar_lea.vmem %s4157_s7, 256 }
0x16d6   : > { %p5273_p9 = scmp.ne.s32.totalorder %s4157_s7, %s5272_s16  ;;  %p5280_p2 = scmp.lt.s32.totalorder %s5272_s16, %s5272_s16 }
0x16d7   : > { %5084 = vrsqrt.f32 %v3837_v45  ;;  %v3834_v47 = vmax.f32 %v3832_v46, 0.0 }
0x16d8   : > { %p5274_p0 = pnand %p5273_p9, %p4855_p10  ;;  %p5281_p4 = por %p5280_p2, %p5279_p12 }
0x16d9   : > { %v3838_v48 = vadd.f32 1e-05, %v3834_v47 }
0x16da   : > { %p5275_p1 = pneg %p5274_p0 }
0x16db   : > { %5086 = vrsqrt.f32 %v3838_v48 }
0x16dc   : > { %p5282_p11 = pnand %p5281_p4, %p5275_p1 }
0x16e1   : > { %v5085_v51 = vpop.eup %5084 }
0x16e2   : > { %v3841_v52 = vmul.f32 %v5085_v51, %v3835_v49 }
0x16e4   : > { %v3849_v59 = vmul.f32 %v4466_v53, %v3841_v52 }
0x16e5   : > { %v5087_v55 = vpop.eup %5086 }
0x16e6   : > { %v3842_v58 = vmul.f32 %v5087_v55, %v3836_v54  ;;  %v3857_v35 = vadd.f32 %v4467_v37, %v3849_v59 }
0x16e8   : > { %v3850_v60 = vmul.f32 %v4466_v53, %v3842_v58 }
0x16ea   : > { %v3858_v0 = vadd.f32 %v4467_v37, %v3850_v60 }
0x16ec   : > { %v3859_v5 = vpack.c.bf16 %v3858_v0, %v3857_v35 }
0x16ee   : > { %4001 = vmatmul.mubr.bf16.vlgmr.msra.gmra.mrb[44].mxu1 %v3859_v5 }
0x17c1   : > { %v4002_v25 = vpop.f32.mrb[44].mxu1 }
0x17c2   : > { %v4004_v62 = vpop.f32.mrb[45].mxu1  ;;  %v4003_v1 = vadd.f32 %v4002_v25, %v3881_v29 }
0x17c3   : > { %v4005_v32 = vadd.f32 %v4004_v62, %v3885_v24  ;;  %v4006_v40 = vpop.f32.mrb[46].mxu1 }
0x17c4   : > { %v4008_v41 = vpop.f32.mrb[47].mxu1  ;;  %v4007_v38 = vadd.f32 %v4006_v40, %v3881_v29 }
0x17c5   : > { %v4013_v4 = vmul.f32 0.044715, %v4005_v32  ;;  %v4009_v11 = vadd.f32 %v4008_v41, %v3885_v24  ;;  %v4011_v31 = vmul.f32 0.5, %v4005_v32 }
0x17c7   : > { %v4015_v13 = vmul.f32 %v4013_v4, %v4005_v32  ;;  %v4014_v17 = vmul.f32 0.044715, %v4009_v11  ;;  %v4012_v33 = vmul.f32 0.5, %v4009_v11 }
0x17c9   : > { %v4017_v26 = vmul.f32 %v4015_v13, %v4005_v32  ;;  %v4016_v20 = vmul.f32 %v4014_v17, %v4009_v11 }
0x17cb   : > { %v4019_v21 = vadd.f32 %v4017_v26, %v4005_v32  ;;  %v4018_v22 = vmul.f32 %v4016_v20, %v4009_v11 }
0x17cd   : > { %v4021_v9 = vmul.f32 0.7978846, %v4019_v21  ;;  %v4020_v23 = vadd.f32 %v4018_v22, %v4009_v11 }
0x17cf   : > { %5088 = vtanh.f32 %v4021_v9  ;;  %v4022_v27 = vmul.f32 0.7978846, %v4020_v23 }
0x17d1   : > { %5090 = vtanh.f32 %v4022_v27 }
0x17d9   : > { %v5089_v30 = vpop.eup %5088 }
0x17da   : > { %v4025_v63 = vadd.f32 1.0, %v5089_v30 }
0x17db   : > { %v5091_v3 = vpop.eup %5090 }
0x17dc   : > { %v4026_v34 = vadd.f32 1.0, %v5091_v3  ;;  %v4027_v36 = vmul.f32 %v4025_v63, %v4011_v31 }
0x17de   : > { %v4028_v39 = vmul.f32 %v4026_v34, %v4012_v33  ;;  %v4029_v42 = vmul.f32 %v4027_v36, %v4003_v1 }
0x17e0   : > { %v4030_v43 = vmul.f32 %v4028_v39, %v4007_v38 }
0x17e2   : > { %v4031_v61 = vpack.c.bf16 %v4030_v43, %v4029_v42 }
0x17e4   : > { %4808 = vmatmul.mubr.bf16.vlgmr.msra.gmra.mrb[32].mxu0 %v4031_v61 }
0x18b7   : > { %v4137_v45 = vpop.f32.mrb[32].mxu0 }
0x18b8   : > { %v4138_v46 = vadd.f32 %v4484_v44, %v4137_v45  ;;  %v4809_v47 = vpop.f32.mrb[33].mxu0 }
0x18b9   : > { %v4140_v48 = vpop.f32.mrb[34].mxu0 }
0x18ba   : > { %v4144_v49 = vadd.f32 %v4138_v46, %v6201_v57  ;;  %v4141_v51 = vadd.f32 %v4484_v44, %v4140_v48  ;;  %v4810_v52 = vpop.f32.mrb[35].mxu0 }
0x18bc   : > { %4146 = vst [vmem:[#allocation2] sm:$0xff] %v4144_v49  ;;  %4148 = vst [vmem:[#allocation14] sm:$0xff] %v4144_v49  ;;  %v4145_v53 = vadd.f32 %v4141_v51, %v6203_v15 }
0x18be   : > { %4147 = vst [vmem:[#allocation2 + $0x8] sm:$0xff] %v4145_v53  ;;  %4149 = vst [vmem:[#allocation14 + $0x8] sm:$0xff] %v4145_v53 }
0x18bf   : > { %5285 = shalt.err (!%p5282_p11)
}
0x18c0   : > { %s6374_s3 = sld [smem:[#allocation33_spill]] }
0x18c6   : > { %s5286_s27 = scalar_lea.hbm %s6374_s3, 256 }
0x18c7   : > { %p5287_p7 = scmp.ne.s32.totalorder %s6374_s3, %s5286_s27  ;;  %p5292_p13 = scmp.lt.u32.totalorder %s5286_s27, %s6374_s3 }
0x18c9   : > { %p5288_p3 = pnand %p5287_p7, %p4855_p10 }
0x18cb   : > { %p5289_p5 = pneg %p5288_p3 }
0x18cd   : > { %p5294_p6 = pnand %p5292_p13, %p5289_p5 }
0x18cf   : > { %5297 = shalt.err (!%p5294_p6)
}
0x18d0   : > { %s5373_s6 = smov 128   ;;  %s5374_s11 = smov 8  }
0x18d1   : > { %4829 = dma.vmem_to_hbm [thread:$0]  (%p4855_p10), %s4157_s7, 256, %s6374_s3, [#allocation5], %s5373_s6, %s5373_s6, %s5374_s11  }
0x18d2   : > { %5331 = dma.done.wait (%p4855_p10), [#allocation5], 256  }
0x18d3   : > { %5333 = vsyncadd (%p4855_p10), [#allocation5], 4294967040 }
0x18d4 PF: > { %s6375_s24 = sld [smem:[#allocation21_spill]]  ;;  %s6376_s20 = sld [smem:[#allocation20_spill]] }
0x18d5   : > { %s6377_s23 = sld [smem:[#allocation22_spill]]  ;;  %s6378_s21 = smov %s5340_s22 }
0x18da   : > { %p30_p8 = scmp.ge.s32.totalorder %s6375_s24, 4   ;;  %s6379_s22 = smov %s6376_s20 }
0x18dc   :  { %32 = sbr.rel (!%p30_p8) target bundleno = 21 (0x15), region = 180 }
0x18e3   :  { %4172 = vsyncpa [#allocation4], 1 }
0x18e4   :  { %4174 = vsyncpa [#allocation4 + $0x1], 1 }
0x18e5   :  { %4175 = vsyncpa [#allocation7], 1 }
0x18e6   :  { %4177 = vsyncpa [#allocation7 + $0x1], 1 }
0x18e7   :  { %4178 = vsyncpa [#allocation10], 1 }
0x18e8   :  { %4180 = vsyncpa [#allocation10 + $0x1], 1 }
0x18e9   :  { %4181 = vsyncpa [#allocation13], 1 }
0x18ea   :  { %4183 = vsyncpa [#allocation13 + $0x1], 1 }
0x18eb   :  { %4184 = vsyncpa [#allocation5], 1 }
0x18ec   :  { %4186 = vsyncpa [#allocation5 + $0x1], 1 }

</bundles_post_ra>
